<compile_context>
chip_gen: v6e
topology: v6e:2x2x1
jax: 0.10.0
libtpu: 0.0.40
codegen_flags: <defaults>
</compile_context>

<pallas_src>
import functools

import jax
import jax.numpy as jnp
from jax import lax
from jax.experimental import pallas as pl
from jax.experimental.pallas import tpu as pltpu

INPUT_DIM = 4
BIG_DIM = 32
HIDDEN_DIM = 2

EDGE_TILE = 1024   # edges per grid step (review: sweep 512-2048); edge axis = lanes
LANE = 128


def _round_up(x, m):
    return ((x + m - 1) // m) * m


# ----------------------------------------------------------------------------
# Fused EdgeConv kernel (gather + message MLP + scatter-mean, all in VMEM)
# ----------------------------------------------------------------------------
def fused_edgeconv_kernel(x_ref, srcl_ref, dstl_ref, dsts_ref,
                          bns_ref, bnt_ref,
                          w1a_ref, w1b_ref, b1_ref,
                          w2_ref, b2_ref, w3_ref, b3_ref,
                          invdeg_ref, out_ref, acc_ref, *, relu_last):
    t = pl.program_id(0)

    @pl.when(t == 0)
    def _init():
        acc_ref[...] = jnp.zeros_like(acc_ref)

    f, n_pad = x_ref.shape
    e_tile = srcl_ref.shape[1]

    # BatchNorm folded in (scale=1, shift=0 for the decoder layer).
    x = x_ref[...] * bns_ref[...] + bnt_ref[...]                      # [F, N_pad]

    # Gather-orientation one-hots [N_pad, E_TILE].  Pad edges carry a sentinel
    # node id >= N_pad, so their columns are all zero (they gather zeros).
    n_iota = lax.broadcasted_iota(jnp.int32, (n_pad, e_tile), 0)
    oh_dst_g = (n_iota == dstl_ref[...]).astype(jnp.float32)
    oh_src_g = (n_iota == srcl_ref[...]).astype(jnp.float32)
    x_i = jnp.dot(x, oh_dst_g, preferred_element_type=jnp.float32)    # [F, E_TILE]
    x_j = jnp.dot(x, oh_src_g, preferred_element_type=jnp.float32)

    # Edge MLP; the [x_i, x_j - x_i] concat is pre-folded into w1a / w1b.
    h = (jnp.dot(w1a_ref[...], x_i, preferred_element_type=jnp.float32)
         + jnp.dot(w1b_ref[...], x_j, preferred_element_type=jnp.float32)
         + b1_ref[...])
    h = jnp.maximum(h, 0.0)
    h = jnp.dot(w2_ref[...], h, preferred_element_type=jnp.float32) + b2_ref[...]
    h = jnp.maximum(h, 0.0)
    m = jnp.dot(w3_ref[...], h, preferred_element_type=jnp.float32) + b3_ref[...]
    if relu_last:
        m = jnp.maximum(m, 0.0)                                       # [dout, E_TILE]

    # Scatter-sum via one-hot matmul.  Pad-edge rows are all zero, so their
    # (bias-generated, nonzero) messages never reach the per-node sums.
    e_iota = lax.broadcasted_iota(jnp.int32, (e_tile, n_pad), 1)
    oh_dst_s = (e_iota == dsts_ref[...]).astype(jnp.float32)          # [E_TILE, N_pad]
    acc_ref[...] += jnp.dot(m, oh_dst_s, preferred_element_type=jnp.float32)

    @pl.when(t == pl.num_programs(0) - 1)
    def _finalize():
        # 'mean' aggregation: multiply by precomputed 1 / max(degree, 1).
        out_ref[...] = (acc_ref[...] * invdeg_ref[...]).astype(out_ref.dtype)


def fused_edge_conv(x_fm, src_lane, dst_lane, dst_sub, inv_deg,
                    bn_scale, bn_shift, params_t, *, relu_last, e_tile):
    (w1a, w1b, b1, w2, b2, w3, b3) = params_t
    f, n_pad = x_fm.shape
    e_pad = src_lane.shape[1]
    h1 = w1a.shape[0]
    h2 = w2.shape[0]
    dout = w3.shape[0]
    const = lambda t: (0, 0)
    kernel = functools.partial(fused_edgeconv_kernel, relu_last=relu_last)
    return pl.pallas_call(
        kernel,
        out_shape=jax.ShapeDtypeStruct((dout, n_pad), jnp.float32),
        grid=(e_pad // e_tile,),
        in_specs=[
            pl.BlockSpec((f, n_pad), const),                # node features (resident)
            pl.BlockSpec((1, e_tile), lambda t: (0, t)),    # src ids, lane layout
            pl.BlockSpec((1, e_tile), lambda t: (0, t)),    # dst ids, lane layout
            pl.BlockSpec((e_tile, 1), lambda t: (t, 0)),    # dst ids, sublane layout
            pl.BlockSpec((f, 1), const),                    # BN scale (folded)
            pl.BlockSpec((f, 1), const),                    # BN shift (folded)
            pl.BlockSpec((h1, f), const),                   # (A - B)^T
            pl.BlockSpec((h1, f), const),                   # B^T
            pl.BlockSpec((h1, 1), const),
            pl.BlockSpec((h2, h1), const),
            pl.BlockSpec((h2, 1), const),
            pl.BlockSpec((dout, h2), const),
            pl.BlockSpec((dout, 1), const),
            pl.BlockSpec((1, n_pad), const),                # 1 / degree
        ],
        out_specs=pl.BlockSpec((dout, n_pad), const),
        scratch_shapes=[pltpu.VMEM((dout, n_pad), jnp.float32)],
        compiler_params=pltpu.CompilerParams(
            # edge-tile axis reduces into the resident accumulator
            dimension_semantics=("arbitrary",)),
    )(x_fm, src_lane, dst_lane, dst_sub, bn_scale, bn_shift,
      w1a, w1b, b1, w2, b2, w3, b3, inv_deg)


# ----------------------------------------------------------------------------
# Parameters
# ----------------------------------------------------------------------------
def init_linear(key, din, dout):
    kw, kb = jax.random.split(key)
    scale = 1.0 / jnp.sqrt(jnp.float32(din))
    w = jax.random.uniform(kw, (din, dout), jnp.float32, -scale, scale)
    b = jax.random.uniform(kb, (dout,), jnp.float32, -scale, scale)
    return w, b


def init_params(key):
    keys = jax.random.split(key, 6)
    enc = (*init_linear(keys[0], 2 * INPUT_DIM, BIG_DIM),
           *init_linear(keys[1], BIG_DIM, BIG_DIM),
           *init_linear(keys[2], BIG_DIM, HIDDEN_DIM))
    dec = (*init_linear(keys[3], 2 * HIDDEN_DIM, BIG_DIM),
           *init_linear(keys[4], BIG_DIM, BIG_DIM),
           *init_linear(keys[5], BIG_DIM, INPUT_DIM))
    bn_gamma = jnp.ones((INPUT_DIM,), jnp.float32)
    bn_beta = jnp.zeros((INPUT_DIM,), jnp.float32)
    return enc, dec, bn_gamma, bn_beta


def _prep_mlp_params(params, in_dim):
    """Transpose to feature-major and fold the [x_i, x_j - x_i] concat into W1."""
    w1, b1, w2, b2, w3, b3 = params
    a = w1[:in_dim]            # multiplies x_i
    b_part = w1[in_dim:]       # multiplies (x_j - x_i)
    return ((a - b_part).T, b_part.T, b1.reshape(-1, 1),
            w2.T, b2.reshape(-1, 1),
            w3.T, b3.reshape(-1, 1))


# ----------------------------------------------------------------------------
# Full forward
# ----------------------------------------------------------------------------
def edge_net_emd_forward(x, edge_index, params):
    enc, dec, bn_gamma, bn_beta = params
    n, f = x.shape
    num_edges = edge_index.shape[1]

    n_pad = _round_up(n, LANE)
    e_tile = min(EDGE_TILE, _round_up(num_edges, LANE))
    e_pad = _round_up(num_edges, e_tile)

    # ---- graph-static preprocessing (computed once, reused by both layers) ----
    src = edge_index[0].astype(jnp.int32)     # j (source)
    dst = edge_index[1].astype(jnp.int32)     # i (aggregation target)
    pad_id = jnp.int32(n_pad)                 # sentinel: matches no node id
    src_pad = jnp.full((e_pad,), pad_id, jnp.int32).at[:num_edges].set(src)
    dst_pad = jnp.full((e_pad,), pad_id, jnp.int32).at[:num_edges].set(dst)
    src_lane = src_pad.reshape(1, e_pad)
    dst_lane = dst_pad.reshape(1, e_pad)
    dst_sub = dst_pad.reshape(e_pad, 1)

    deg = jnp.zeros((n_pad,), jnp.float32).at[dst].add(1.0)
    inv_deg = (1.0 / jnp.maximum(deg, 1.0)).reshape(1, n_pad)

    # Feature-major node features, node axis lane-padded.
    x_fm = jnp.zeros((f, n_pad), jnp.float32).at[:, :n].set(x.T)

    # BatchNorm1d (training-mode biased batch stats, eps=1e-5), folded into the
    # encoder kernel as a per-feature scale/shift.
    mean = jnp.mean(x, axis=0)
    var = jnp.mean((x - mean) ** 2, axis=0)
    bn_scale = (bn_gamma * jax.lax.rsqrt(var + 1e-5)).reshape(f, 1)
    bn_shift = (bn_beta - mean * bn_scale[:, 0]).reshape(f, 1)

    one = jnp.ones((HIDDEN_DIM, 1), jnp.float32)
    zero = jnp.zeros((HIDDEN_DIM, 1), jnp.float32)

    enc_t = _prep_mlp_params(enc, INPUT_DIM)
    dec_t = _prep_mlp_params(dec, HIDDEN_DIM)

    h_fm = fused_edge_conv(x_fm, src_lane, dst_lane, dst_sub, inv_deg,
                           bn_scale, bn_shift, enc_t,
                           relu_last=True, e_tile=e_tile)     # [HIDDEN_DIM, n_pad]
    y_fm = fused_edge_conv(h_fm, src_lane, dst_lane, dst_sub, inv_deg,
                           one, zero, dec_t,
                           relu_last=False, e_tile=e_tile)    # [INPUT_DIM, n_pad]

    y = y_fm[:, :n].T                                         # back to [N, INPUT_DIM]
    # TODO(synk): loss = emd_model(preprocess(y, x, batch)) uses a pretrained EMD
    #             network ('EmdNNRel.best.pth'); not reproducible in-script.
    return y


# ----------------------------------------------------------------------------
# Pure-JAX reference (correctness check only)
# ----------------------------------------------------------------------------
def reference_forward(x, edge_index, params):
    enc, dec, bn_gamma, bn_beta = params
    mean = jnp.mean(x, axis=0)
    var = jnp.mean((x - mean) ** 2, axis=0)
    h = (x - mean) * jax.lax.rsqrt(var + 1e-5) * bn_gamma + bn_beta

    def conv(h, prm, relu_last):
        w1, b1, w2, b2, w3, b3 = prm
        src, dst = edge_index[0], edge_index[1]
        e = jnp.concatenate([h[dst], h[src] - h[dst]], axis=-1)
        m = jnp.maximum(e @ w1 + b1, 0.0)
        m = jnp.maximum(m @ w2 + b2, 0.0)
        m = m @ w3 + b3
        if relu_last:
            m = jnp.maximum(m, 0.0)
        summed = jax.ops.segment_sum(m, dst, num_segments=h.shape[0])
        cnt = jax.ops.segment_sum(jnp.ones((dst.shape[0], 1), jnp.float32), dst,
                                  num_segments=h.shape[0])
        return summed / jnp.maximum(cnt, 1.0)

    h = conv(h, enc, True)
    h = conv(h, dec, False)
    return h


# ----------------------------------------------------------------------------
# Example run
# ----------------------------------------------------------------------------
def build_example_graph(key, num_graphs=4, nodes_per_graph=8):
    num_nodes = num_graphs * nodes_per_graph
    x = jax.random.normal(key, (num_nodes, INPUT_DIM), jnp.float32)
    srcs, dsts = [], []
    for g in range(num_graphs):
        base = g * nodes_per_graph
        for a in range(nodes_per_graph):
            for b in range(nodes_per_graph):
                if a != b:
                    srcs.append(base + a)   # source j
                    dsts.append(base + b)   # target i
    edge_index = jnp.array([srcs, dsts], dtype=jnp.int32)
    batch = jnp.repeat(jnp.arange(num_graphs, dtype=jnp.int32), nodes_per_graph)
    return x, edge_index, batch


if __name__ == "__main__":
    key = jax.random.PRNGKey(0)
    k_data, k_param = jax.random.split(key)
    x, edge_index, batch = build_example_graph(k_data)  # batch only used by the EMD loss
    params = init_params(k_param)

    fwd = jax.jit(lambda xx, ei: edge_net_emd_forward(xx, ei, params))
    out = fwd(x, edge_index)
    jax.block_until_ready(out)

    ref = reference_forward(x, edge_index, params)
    assert out.shape == (x.shape[0], INPUT_DIM)
    assert jnp.allclose(out, ref, rtol=3e-2, atol=3e-2), (
        "Pallas output mismatch vs pure-JAX reference")
    print("KERNEL_OK")
</pallas_src>

<mosaic_0001>
module attributes {stable_mosaic.version = 11 : i64} {
  func.func private @main(%arg0: i32) attributes {dimension_semantics = [#tpu.dimension_semantics<core_parallel>], iteration_bounds = array<i64: 2>, tpu.core_type = #tpu.core_type<sc_scalar_subcore>, window_params = []} {
    return
  }
}

module attributes {stable_mosaic.version = 11 : i64} {
  func.func private @main(%arg0: i32) attributes {dimension_semantics = [#tpu.dimension_semantics<core_parallel>], iteration_bounds = array<i64: 2>, tpu.core_type = #tpu.core_type<sc_scalar_subcore>, window_params = []} {
    return
  }
}

module attributes {stable_mosaic.version = 11 : i64} {
  func.func @fused_edgeconv_kernel(%arg0: i32, %arg1: memref<4x128xf32, #tpu.memory_space<vmem>>, %arg2: memref<1x256xi32, #tpu.memory_space<vmem>>, %arg3: memref<1x256xi32, #tpu.memory_space<vmem>>, %arg4: memref<256x1xi32, #tpu.memory_space<vmem>>, %arg5: memref<4x1xf32, #tpu.memory_space<vmem>>, %arg6: memref<4x1xf32, #tpu.memory_space<vmem>>, %arg7: memref<32x4xf32, #tpu.memory_space<vmem>>, %arg8: memref<32x4xf32, #tpu.memory_space<vmem>>, %arg9: memref<32x1xf32, #tpu.memory_space<vmem>>, %arg10: memref<32x32xf32, #tpu.memory_space<vmem>>, %arg11: memref<32x1xf32, #tpu.memory_space<vmem>>, %arg12: memref<2x32xf32, #tpu.memory_space<vmem>>, %arg13: memref<2x1xf32, #tpu.memory_space<vmem>>, %arg14: memref<1x128xf32, #tpu.memory_space<vmem>>, %arg15: memref<2x128xf32, #tpu.memory_space<vmem>>, %arg16: memref<2x128xf32, #tpu.memory_space<vmem>>) attributes {dimension_semantics = [#tpu.dimension_semantics<arbitrary>], iteration_bounds = array<i64: 1>, scalar_prefetch = 0 : i64, scratch_operands = 1 : i64, tpu.core_type = #tpu.core_type<tc>, window_params = [{pipeline_mode = #tpu.pipeline_mode<synchronous>, transform_indices = @transform_0, window_bounds = array<i64: 4, 128>}, {transform_indices = @transform_1, window_bounds = array<i64: 1, 256>}, {transform_indices = @transform_2, window_bounds = array<i64: 1, 256>}, {transform_indices = @transform_3, window_bounds = array<i64: 256, 1>}, {pipeline_mode = #tpu.pipeline_mode<synchronous>, transform_indices = @transform_4, window_bounds = array<i64: 4, 1>}, {pipeline_mode = #tpu.pipeline_mode<synchronous>, transform_indices = @transform_5, window_bounds = array<i64: 4, 1>}, {pipeline_mode = #tpu.pipeline_mode<synchronous>, transform_indices = @transform_6, window_bounds = array<i64: 32, 4>}, {pipeline_mode = #tpu.pipeline_mode<synchronous>, transform_indices = @transform_7, window_bounds = array<i64: 32, 4>}, {pipeline_mode = #tpu.pipeline_mode<synchronous>, transform_indices = @transform_8, window_bounds = array<i64: 32, 1>}, {pipeline_mode = #tpu.pipeline_mode<synchronous>, transform_indices = @transform_9, window_bounds = array<i64: 32, 32>}, {pipeline_mode = #tpu.pipeline_mode<synchronous>, transform_indices = @transform_10, window_bounds = array<i64: 32, 1>}, {pipeline_mode = #tpu.pipeline_mode<synchronous>, transform_indices = @transform_11, window_bounds = array<i64: 2, 32>}, {pipeline_mode = #tpu.pipeline_mode<synchronous>, transform_indices = @transform_12, window_bounds = array<i64: 2, 1>}, {pipeline_mode = #tpu.pipeline_mode<synchronous>, transform_indices = @transform_13, window_bounds = array<i64: 1, 128>}, {pipeline_mode = #tpu.pipeline_mode<synchronous>, transform_indices = @transform_14, window_bounds = array<i64: 2, 128>}]} {
    %c0_i32 = arith.constant 0 : i32
    %0 = arith.cmpi eq, %arg0, %c0_i32 : i32
    %1 = arith.extui %0 : i1 to i32
    %c0_i32_0 = arith.constant 0 : i32
    %2 = arith.cmpi ne, %1, %c0_i32_0 : i32
    scf.if %2 {
      %cst_41 = arith.constant 0.000000e+00 : f32
      %60 = vector.broadcast %cst_41 : f32 to vector<2x128xf32>
      %c0_42 = arith.constant 0 : index
      %c0_43 = arith.constant 0 : index
      %61 = vector.load %arg16[%c0_42, %c0_43] : memref<2x128xf32, #tpu.memory_space<vmem>>, vector<2x128xf32>
      tpu.vector_store %arg16[%c0_42, %c0_43], %60 {strides = array<i32>} : memref<2x128xf32, #tpu.memory_space<vmem>>, vector<2x128xf32>,
    } else {
    }
    %c0 = arith.constant 0 : index
    %c0_1 = arith.constant 0 : index
    %3 = vector.load %arg1[%c0, %c0_1] : memref<4x128xf32, #tpu.memory_space<vmem>>, vector<4x128xf32>
    %c0_2 = arith.constant 0 : index
    %c0_3 = arith.constant 0 : index
    %4 = vector.load %arg5[%c0_2, %c0_3] : memref<4x1xf32, #tpu.memory_space<vmem>>, vector<4x1xf32>
    %5 = vector.broadcast %4 : vector<4x1xf32> to vector<4x128xf32>
    %6 = arith.mulf %3, %5 : vector<4x128xf32>
    %c0_4 = arith.constant 0 : index
    %c0_5 = arith.constant 0 : index
    %7 = vector.load %arg6[%c0_4, %c0_5] : memref<4x1xf32, #tpu.memory_space<vmem>>, vector<4x1xf32>
    %8 = vector.broadcast %7 : vector<4x1xf32> to vector<4x128xf32>
    %9 = arith.addf %6, %8 : vector<4x128xf32>
    %10 = tpu.iota {dimensions = array<i32: 0>} : vector<128x256xi32>
    %c0_6 = arith.constant 0 : index
    %c0_7 = arith.constant 0 : index
    %11 = vector.load %arg3[%c0_6, %c0_7] : memref<1x256xi32, #tpu.memory_space<vmem>>, vector<1x256xi32>
    %12 = vector.broadcast %11 : vector<1x256xi32> to vector<128x256xi32>
    %13 = arith.cmpi eq, %10, %12 : vector<128x256xi32>
    %14 = arith.extui %13 : vector<128x256xi1> to vector<128x256xi32>
    %15 = arith.sitofp %14 : vector<128x256xi32> to vector<128x256xf32>
    %c0_8 = arith.constant 0 : index
    %c0_9 = arith.constant 0 : index
    %16 = vector.load %arg2[%c0_8, %c0_9] : memref<1x256xi32, #tpu.memory_space<vmem>>, vector<1x256xi32>
    %17 = vector.broadcast %16 : vector<1x256xi32> to vector<128x256xi32>
    %18 = arith.cmpi eq, %10, %17 : vector<128x256xi32>
    %19 = arith.extui %18 : vector<128x256xi1> to vector<128x256xi32>
    %20 = arith.sitofp %19 : vector<128x256xi32> to vector<128x256xf32>
    %cst = arith.constant dense<0.000000e+00> : vector<4x256xf32>
    %21 = tpu.matmul %9, %15, %cst {dimension_numbers = #tpu.dot_dimension_numbers<[1], [0], [0], [1], [0, 0, 1, 1], [], []>} : vector<4x128xf32>, vector<128x256xf32>, vector<4x256xf32> -> vector<4x256xf32>
    %cst_10 = arith.constant dense<0.000000e+00> : vector<4x256xf32>
    %22 = tpu.matmul %9, %20, %cst_10 {dimension_numbers = #tpu.dot_dimension_numbers<[1], [0], [0], [1], [0, 0, 1, 1], [], []>} : vector<4x128xf32>, vector<128x256xf32>, vector<4x256xf32> -> vector<4x256xf32>
    %c0_11 = arith.constant 0 : index
    %c0_12 = arith.constant 0 : index
    %23 = vector.load %arg7[%c0_11, %c0_12] : memref<32x4xf32, #tpu.memory_space<vmem>>, vector<32x4xf32>
    %cst_13 = arith.constant dense<0.000000e+00> : vector<32x256xf32>
    %24 = tpu.matmul %23, %21, %cst_13 {dimension_numbers = #tpu.dot_dimension_numbers<[1], [0], [0], [1], [0, 0, 1, 1], [], []>} : vector<32x4xf32>, vector<4x256xf32>, vector<32x256xf32> -> vector<32x256xf32>
    %c0_14 = arith.constant 0 : index
    %c0_15 = arith.constant 0 : index
    %25 = vector.load %arg8[%c0_14, %c0_15] : memref<32x4xf32, #tpu.memory_space<vmem>>, vector<32x4xf32>
    %cst_16 = arith.constant dense<0.000000e+00> : vector<32x256xf32>
    %26 = tpu.matmul %25, %22, %cst_16 {dimension_numbers = #tpu.dot_dimension_numbers<[1], [0], [0], [1], [0, 0, 1, 1], [], []>} : vector<32x4xf32>, vector<4x256xf32>, vector<32x256xf32> -> vector<32x256xf32>
    %27 = arith.addf %24, %26 : vector<32x256xf32>
    %c0_17 = arith.constant 0 : index
    %c0_18 = arith.constant 0 : index
    %28 = vector.load %arg9[%c0_17, %c0_18] : memref<32x1xf32, #tpu.memory_space<vmem>>, vector<32x1xf32>
    %29 = vector.broadcast %28 : vector<32x1xf32> to vector<32x256xf32>
    %30 = arith.addf %27, %29 : vector<32x256xf32>
    %cst_19 = arith.constant 0.000000e+00 : f32
    %31 = vector.broadcast %cst_19 : f32 to vector<32x256xf32>
    %32 = arith.maximumf %30, %31 : vector<32x256xf32>
    %c0_20 = arith.constant 0 : index
    %c0_21 = arith.constant 0 : index
    %33 = vector.load %arg10[%c0_20, %c0_21] : memref<32x32xf32, #tpu.memory_space<vmem>>, vector<32x32xf32>
    %cst_22 = arith.constant dense<0.000000e+00> : vector<32x256xf32>
    %34 = tpu.matmul %33, %32, %cst_22 {dimension_numbers = #tpu.dot_dimension_numbers<[1], [0], [0], [1], [0, 0, 1, 1], [], []>} : vector<32x32xf32>, vector<32x256xf32>, vector<32x256xf32> -> vector<32x256xf32>
    %c0_23 = arith.constant 0 : index
    %c0_24 = arith.constant 0 : index
    %35 = vector.load %arg11[%c0_23, %c0_24] : memref<32x1xf32, #tpu.memory_space<vmem>>, vector<32x1xf32>
    %36 = vector.broadcast %35 : vector<32x1xf32> to vector<32x256xf32>
    %37 = arith.addf %34, %36 : vector<32x256xf32>
    %cst_25 = arith.constant 0.000000e+00 : f32
    %38 = vector.broadcast %cst_25 : f32 to vector<32x256xf32>
    %39 = arith.maximumf %37, %38 : vector<32x256xf32>
    %c0_26 = arith.constant 0 : index
    %c0_27 = arith.constant 0 : index
    %40 = vector.load %arg12[%c0_26, %c0_27] : memref<2x32xf32, #tpu.memory_space<vmem>>, vector<2x32xf32>
    %cst_28 = arith.constant dense<0.000000e+00> : vector<2x256xf32>
    %41 = tpu.matmul %40, %39, %cst_28 {dimension_numbers = #tpu.dot_dimension_numbers<[1], [0], [0], [1], [0, 0, 1, 1], [], []>} : vector<2x32xf32>, vector<32x256xf32>, vector<2x256xf32> -> vector<2x256xf32>
    %c0_29 = arith.constant 0 : index
    %c0_30 = arith.constant 0 : index
    %42 = vector.load %arg13[%c0_29, %c0_30] : memref<2x1xf32, #tpu.memory_space<vmem>>, vector<2x1xf32>
    %43 = vector.broadcast %42 : vector<2x1xf32> to vector<2x256xf32>
    %44 = arith.addf %41, %43 : vector<2x256xf32>
    %cst_31 = arith.constant 0.000000e+00 : f32
    %45 = vector.broadcast %cst_31 : f32 to vector<2x256xf32>
    %46 = arith.maximumf %44, %45 : vector<2x256xf32>
    %47 = tpu.iota {dimensions = array<i32: 1>} : vector<256x128xi32>
    %c0_32 = arith.constant 0 : index
    %c0_33 = arith.constant 0 : index
    %48 = vector.load %arg4[%c0_32, %c0_33] : memref<256x1xi32, #tpu.memory_space<vmem>>, vector<256x1xi32>
    %49 = vector.broadcast %48 : vector<256x1xi32> to vector<256x128xi32>
    %50 = arith.cmpi eq, %47, %49 : vector<256x128xi32>
    %51 = arith.extui %50 : vector<256x128xi1> to vector<256x128xi32>
    %52 = arith.sitofp %51 : vector<256x128xi32> to vector<256x128xf32>
    %c0_34 = arith.constant 0 : index
    %c0_35 = arith.constant 0 : index
    %53 = vector.load %arg16[%c0_34, %c0_35] : memref<2x128xf32, #tpu.memory_space<vmem>>, vector<2x128xf32>
    %cst_36 = arith.constant dense<0.000000e+00> : vector<2x128xf32>
    %54 = tpu.matmul %46, %52, %cst_36 {dimension_numbers = #tpu.dot_dimension_numbers<[1], [0], [0], [1], [0, 0, 1, 1], [], []>} : vector<2x256xf32>, vector<256x128xf32>, vector<2x128xf32> -> vector<2x128xf32>
    %55 = arith.addf %53, %54 : vector<2x128xf32>
    %c0_37 = arith.constant 0 : index
    %c0_38 = arith.constant 0 : index
    %56 = vector.load %arg16[%c0_37, %c0_38] : memref<2x128xf32, #tpu.memory_space<vmem>>, vector<2x128xf32>
    tpu.vector_store %arg16[%c0_37, %c0_38], %55 {strides = array<i32>} : memref<2x128xf32, #tpu.memory_space<vmem>>, vector<2x128xf32>,
    %c0_i32_39 = arith.constant 0 : i32
    %57 = arith.cmpi eq, %arg0, %c0_i32_39 : i32
    %58 = arith.extui %57 : i1 to i32
    %c0_i32_40 = arith.constant 0 : i32
    %59 = arith.cmpi ne, %58, %c0_i32_40 : i32
    scf.if %59 {
      %c0_41 = arith.constant 0 : index
      %c0_42 = arith.constant 0 : index
      %60 = vector.load %arg16[%c0_41, %c0_42] : memref<2x128xf32, #tpu.memory_space<vmem>>, vector<2x128xf32>
      %c0_43 = arith.constant 0 : index
      %c0_44 = arith.constant 0 : index
      %61 = vector.load %arg14[%c0_43, %c0_44] : memref<1x128xf32, #tpu.memory_space<vmem>>, vector<1x128xf32>
      %62 = vector.broadcast %61 : vector<1x128xf32> to vector<2x128xf32>
      %63 = arith.mulf %60, %62 : vector<2x128xf32>
      %c0_45 = arith.constant 0 : index
      %c0_46 = arith.constant 0 : index
      %64 = vector.load %arg15[%c0_45, %c0_46] : memref<2x128xf32, #tpu.memory_space<vmem>>, vector<2x128xf32>
      tpu.vector_store %arg15[%c0_45, %c0_46], %63 {strides = array<i32>} : memref<2x128xf32, #tpu.memory_space<vmem>>, vector<2x128xf32>,
    } else {
    }
    return
  }
  func.func @transform_0(%arg0: i32) -> (i32, i32) {
    %c0_i32 = arith.constant 0 : i32
    %c0_i32_0 = arith.constant 0 : i32
    %c0_i32_1 = arith.constant 0 : i32
    return %c0_i32, %c0_i32_0 : i32, i32
  }
  func.func @transform_1(%arg0: i32) -> (i32, i32) {
    %c0_i32 = arith.constant 0 : i32
    %c0_i32_0 = arith.constant 0 : i32
    return %c0_i32, %arg0 : i32, i32
  }
  func.func @transform_2(%arg0: i32) -> (i32, i32) {
    %c0_i32 = arith.constant 0 : i32
    %c0_i32_0 = arith.constant 0 : i32
    return %c0_i32, %arg0 : i32, i32
  }
  func.func @transform_3(%arg0: i32) -> (i32, i32) {
    %c0_i32 = arith.constant 0 : i32
    %c0_i32_0 = arith.constant 0 : i32
    return %arg0, %c0_i32 : i32, i32
  }
  func.func @transform_4(%arg0: i32) -> (i32, i32) {
    %c0_i32 = arith.constant 0 : i32
    %c0_i32_0 = arith.constant 0 : i32
    %c0_i32_1 = arith.constant 0 : i32
    return %c0_i32, %c0_i32_0 : i32, i32
  }
  func.func @transform_5(%arg0: i32) -> (i32, i32) {
    %c0_i32 = arith.constant 0 : i32
    %c0_i32_0 = arith.constant 0 : i32
    %c0_i32_1 = arith.constant 0 : i32
    return %c0_i32, %c0_i32_0 : i32, i32
  }
  func.func @transform_6(%arg0: i32) -> (i32, i32) {
    %c0_i32 = arith.constant 0 : i32
    %c0_i32_0 = arith.constant 0 : i32
    %c0_i32_1 = arith.constant 0 : i32
    return %c0_i32, %c0_i32_0 : i32, i32
  }
  func.func @transform_7(%arg0: i32) -> (i32, i32) {
    %c0_i32 = arith.constant 0 : i32
    %c0_i32_0 = arith.constant 0 : i32
    %c0_i32_1 = arith.constant 0 : i32
    return %c0_i32, %c0_i32_0 : i32, i32
  }
  func.func @transform_8(%arg0: i32) -> (i32, i32) {
    %c0_i32 = arith.constant 0 : i32
    %c0_i32_0 = arith.constant 0 : i32
    %c0_i32_1 = arith.constant 0 : i32
    return %c0_i32, %c0_i32_0 : i32, i32
  }
  func.func @transform_9(%arg0: i32) -> (i32, i32) {
    %c0_i32 = arith.constant 0 : i32
    %c0_i32_0 = arith.constant 0 : i32
    %c0_i32_1 = arith.constant 0 : i32
    return %c0_i32, %c0_i32_0 : i32, i32
  }
  func.func @transform_10(%arg0: i32) -> (i32, i32) {
    %c0_i32 = arith.constant 0 : i32
    %c0_i32_0 = arith.constant 0 : i32
    %c0_i32_1 = arith.constant 0 : i32
    return %c0_i32, %c0_i32_0 : i32, i32
  }
  func.func @transform_11(%arg0: i32) -> (i32, i32) {
    %c0_i32 = arith.constant 0 : i32
    %c0_i32_0 = arith.constant 0 : i32
    %c0_i32_1 = arith.constant 0 : i32
    return %c0_i32, %c0_i32_0 : i32, i32
  }
  func.func @transform_12(%arg0: i32) -> (i32, i32) {
    %c0_i32 = arith.constant 0 : i32
    %c0_i32_0 = arith.constant 0 : i32
    %c0_i32_1 = arith.constant 0 : i32
    return %c0_i32, %c0_i32_0 : i32, i32
  }
  func.func @transform_13(%arg0: i32) -> (i32, i32) {
    %c0_i32 = arith.constant 0 : i32
    %c0_i32_0 = arith.constant 0 : i32
    %c0_i32_1 = arith.constant 0 : i32
    return %c0_i32, %c0_i32_0 : i32, i32
  }
  func.func @transform_14(%arg0: i32) -> (i32, i32) {
    %c0_i32 = arith.constant 0 : i32
    %c0_i32_0 = arith.constant 0 : i32
    %c0_i32_1 = arith.constant 0 : i32
    return %c0_i32, %c0_i32_0 : i32, i32
  }
}

module attributes {stable_mosaic.version = 11 : i64} {
  func.func @fused_edgeconv_kernel(%arg0: i32, %arg1: memref<2x128xf32, #tpu.memory_space<vmem>>, %arg2: memref<1x256xi32, #tpu.memory_space<vmem>>, %arg3: memref<1x256xi32, #tpu.memory_space<vmem>>, %arg4: memref<256x1xi32, #tpu.memory_space<vmem>>, %arg5: memref<2x1xf32, #tpu.memory_space<vmem>>, %arg6: memref<2x1xf32, #tpu.memory_space<vmem>>, %arg7: memref<32x2xf32, #tpu.memory_space<vmem>>, %arg8: memref<32x2xf32, #tpu.memory_space<vmem>>, %arg9: memref<32x1xf32, #tpu.memory_space<vmem>>, %arg10: memref<32x32xf32, #tpu.memory_space<vmem>>, %arg11: memref<32x1xf32, #tpu.memory_space<vmem>>, %arg12: memref<4x32xf32, #tpu.memory_space<vmem>>, %arg13: memref<4x1xf32, #tpu.memory_space<vmem>>, %arg14: memref<1x128xf32, #tpu.memory_space<vmem>>, %arg15: memref<4x128xf32, #tpu.memory_space<vmem>>, %arg16: memref<4x128xf32, #tpu.memory_space<vmem>>) attributes {dimension_semantics = [#tpu.dimension_semantics<arbitrary>], iteration_bounds = array<i64: 1>, scalar_prefetch = 0 : i64, scratch_operands = 1 : i64, tpu.core_type = #tpu.core_type<tc>, window_params = [{pipeline_mode = #tpu.pipeline_mode<synchronous>, transform_indices = @transform_0, window_bounds = array<i64: 2, 128>}, {transform_indices = @transform_1, window_bounds = array<i64: 1, 256>}, {transform_indices = @transform_2, window_bounds = array<i64: 1, 256>}, {transform_indices = @transform_3, window_bounds = array<i64: 256, 1>}, {pipeline_mode = #tpu.pipeline_mode<synchronous>, transform_indices = @transform_4, window_bounds = array<i64: 2, 1>}, {pipeline_mode = #tpu.pipeline_mode<synchronous>, transform_indices = @transform_5, window_bounds = array<i64: 2, 1>}, {pipeline_mode = #tpu.pipeline_mode<synchronous>, transform_indices = @transform_6, window_bounds = array<i64: 32, 2>}, {pipeline_mode = #tpu.pipeline_mode<synchronous>, transform_indices = @transform_7, window_bounds = array<i64: 32, 2>}, {pipeline_mode = #tpu.pipeline_mode<synchronous>, transform_indices = @transform_8, window_bounds = array<i64: 32, 1>}, {pipeline_mode = #tpu.pipeline_mode<synchronous>, transform_indices = @transform_9, window_bounds = array<i64: 32, 32>}, {pipeline_mode = #tpu.pipeline_mode<synchronous>, transform_indices = @transform_10, window_bounds = array<i64: 32, 1>}, {pipeline_mode = #tpu.pipeline_mode<synchronous>, transform_indices = @transform_11, window_bounds = array<i64: 4, 32>}, {pipeline_mode = #tpu.pipeline_mode<synchronous>, transform_indices = @transform_12, window_bounds = array<i64: 4, 1>}, {pipeline_mode = #tpu.pipeline_mode<synchronous>, transform_indices = @transform_13, window_bounds = array<i64: 1, 128>}, {pipeline_mode = #tpu.pipeline_mode<synchronous>, transform_indices = @transform_14, window_bounds = array<i64: 4, 128>}]} {
    %c0_i32 = arith.constant 0 : i32
    %0 = arith.cmpi eq, %arg0, %c0_i32 : i32
    %1 = arith.extui %0 : i1 to i32
    %c0_i32_0 = arith.constant 0 : i32
    %2 = arith.cmpi ne, %1, %c0_i32_0 : i32
    scf.if %2 {
      %cst_40 = arith.constant 0.000000e+00 : f32
      %58 = vector.broadcast %cst_40 : f32 to vector<4x128xf32>
      %c0_41 = arith.constant 0 : index
      %c0_42 = arith.constant 0 : index
      %59 = vector.load %arg16[%c0_41, %c0_42] : memref<4x128xf32, #tpu.memory_space<vmem>>, vector<4x128xf32>
      tpu.vector_store %arg16[%c0_41, %c0_42], %58 {strides = array<i32>} : memref<4x128xf32, #tpu.memory_space<vmem>>, vector<4x128xf32>,
    } else {
    }
    %c0 = arith.constant 0 : index
    %c0_1 = arith.constant 0 : index
    %3 = vector.load %arg1[%c0, %c0_1] : memref<2x128xf32, #tpu.memory_space<vmem>>, vector<2x128xf32>
    %c0_2 = arith.constant 0 : index
    %c0_3 = arith.constant 0 : index
    %4 = vector.load %arg5[%c0_2, %c0_3] : memref<2x1xf32, #tpu.memory_space<vmem>>, vector<2x1xf32>
    %5 = vector.broadcast %4 : vector<2x1xf32> to vector<2x128xf32>
    %6 = arith.mulf %3, %5 : vector<2x128xf32>
    %c0_4 = arith.constant 0 : index
    %c0_5 = arith.constant 0 : index
    %7 = vector.load %arg6[%c0_4, %c0_5] : memref<2x1xf32, #tpu.memory_space<vmem>>, vector<2x1xf32>
    %8 = vector.broadcast %7 : vector<2x1xf32> to vector<2x128xf32>
    %9 = arith.addf %6, %8 : vector<2x128xf32>
    %10 = tpu.iota {dimensions = array<i32: 0>} : vector<128x256xi32>
    %c0_6 = arith.constant 0 : index
    %c0_7 = arith.constant 0 : index
    %11 = vector.load %arg3[%c0_6, %c0_7] : memref<1x256xi32, #tpu.memory_space<vmem>>, vector<1x256xi32>
    %12 = vector.broadcast %11 : vector<1x256xi32> to vector<128x256xi32>
    %13 = arith.cmpi eq, %10, %12 : vector<128x256xi32>
    %14 = arith.extui %13 : vector<128x256xi1> to vector<128x256xi32>
    %15 = arith.sitofp %14 : vector<128x256xi32> to vector<128x256xf32>
    %c0_8 = arith.constant 0 : index
    %c0_9 = arith.constant 0 : index
    %16 = vector.load %arg2[%c0_8, %c0_9] : memref<1x256xi32, #tpu.memory_space<vmem>>, vector<1x256xi32>
    %17 = vector.broadcast %16 : vector<1x256xi32> to vector<128x256xi32>
    %18 = arith.cmpi eq, %10, %17 : vector<128x256xi32>
    %19 = arith.extui %18 : vector<128x256xi1> to vector<128x256xi32>
    %20 = arith.sitofp %19 : vector<128x256xi32> to vector<128x256xf32>
    %cst = arith.constant dense<0.000000e+00> : vector<2x256xf32>
    %21 = tpu.matmul %9, %15, %cst {dimension_numbers = #tpu.dot_dimension_numbers<[1], [0], [0], [1], [0, 0, 1, 1], [], []>} : vector<2x128xf32>, vector<128x256xf32>, vector<2x256xf32> -> vector<2x256xf32>
    %cst_10 = arith.constant dense<0.000000e+00> : vector<2x256xf32>
    %22 = tpu.matmul %9, %20, %cst_10 {dimension_numbers = #tpu.dot_dimension_numbers<[1], [0], [0], [1], [0, 0, 1, 1], [], []>} : vector<2x128xf32>, vector<128x256xf32>, vector<2x256xf32> -> vector<2x256xf32>
    %c0_11 = arith.constant 0 : index
    %c0_12 = arith.constant 0 : index
    %23 = vector.load %arg7[%c0_11, %c0_12] : memref<32x2xf32, #tpu.memory_space<vmem>>, vector<32x2xf32>
    %cst_13 = arith.constant dense<0.000000e+00> : vector<32x256xf32>
    %24 = tpu.matmul %23, %21, %cst_13 {dimension_numbers = #tpu.dot_dimension_numbers<[1], [0], [0], [1], [0, 0, 1, 1], [], []>} : vector<32x2xf32>, vector<2x256xf32>, vector<32x256xf32> -> vector<32x256xf32>
    %c0_14 = arith.constant 0 : index
    %c0_15 = arith.constant 0 : index
    %25 = vector.load %arg8[%c0_14, %c0_15] : memref<32x2xf32, #tpu.memory_space<vmem>>, vector<32x2xf32>
    %cst_16 = arith.constant dense<0.000000e+00> : vector<32x256xf32>
    %26 = tpu.matmul %25, %22, %cst_16 {dimension_numbers = #tpu.dot_dimension_numbers<[1], [0], [0], [1], [0, 0, 1, 1], [], []>} : vector<32x2xf32>, vector<2x256xf32>, vector<32x256xf32> -> vector<32x256xf32>
    %27 = arith.addf %24, %26 : vector<32x256xf32>
    %c0_17 = arith.constant 0 : index
    %c0_18 = arith.constant 0 : index
    %28 = vector.load %arg9[%c0_17, %c0_18] : memref<32x1xf32, #tpu.memory_space<vmem>>, vector<32x1xf32>
    %29 = vector.broadcast %28 : vector<32x1xf32> to vector<32x256xf32>
    %30 = arith.addf %27, %29 : vector<32x256xf32>
    %cst_19 = arith.constant 0.000000e+00 : f32
    %31 = vector.broadcast %cst_19 : f32 to vector<32x256xf32>
    %32 = arith.maximumf %30, %31 : vector<32x256xf32>
    %c0_20 = arith.constant 0 : index
    %c0_21 = arith.constant 0 : index
    %33 = vector.load %arg10[%c0_20, %c0_21] : memref<32x32xf32, #tpu.memory_space<vmem>>, vector<32x32xf32>
    %cst_22 = arith.constant dense<0.000000e+00> : vector<32x256xf32>
    %34 = tpu.matmul %33, %32, %cst_22 {dimension_numbers = #tpu.dot_dimension_numbers<[1], [0], [0], [1], [0, 0, 1, 1], [], []>} : vector<32x32xf32>, vector<32x256xf32>, vector<32x256xf32> -> vector<32x256xf32>
    %c0_23 = arith.constant 0 : index
    %c0_24 = arith.constant 0 : index
    %35 = vector.load %arg11[%c0_23, %c0_24] : memref<32x1xf32, #tpu.memory_space<vmem>>, vector<32x1xf32>
    %36 = vector.broadcast %35 : vector<32x1xf32> to vector<32x256xf32>
    %37 = arith.addf %34, %36 : vector<32x256xf32>
    %cst_25 = arith.constant 0.000000e+00 : f32
    %38 = vector.broadcast %cst_25 : f32 to vector<32x256xf32>
    %39 = arith.maximumf %37, %38 : vector<32x256xf32>
    %c0_26 = arith.constant 0 : index
    %c0_27 = arith.constant 0 : index
    %40 = vector.load %arg12[%c0_26, %c0_27] : memref<4x32xf32, #tpu.memory_space<vmem>>, vector<4x32xf32>
    %cst_28 = arith.constant dense<0.000000e+00> : vector<4x256xf32>
    %41 = tpu.matmul %40, %39, %cst_28 {dimension_numbers = #tpu.dot_dimension_numbers<[1], [0], [0], [1], [0, 0, 1, 1], [], []>} : vector<4x32xf32>, vector<32x256xf32>, vector<4x256xf32> -> vector<4x256xf32>
    %c0_29 = arith.constant 0 : index
    %c0_30 = arith.constant 0 : index
    %42 = vector.load %arg13[%c0_29, %c0_30] : memref<4x1xf32, #tpu.memory_space<vmem>>, vector<4x1xf32>
    %43 = vector.broadcast %42 : vector<4x1xf32> to vector<4x256xf32>
    %44 = arith.addf %41, %43 : vector<4x256xf32>
    %45 = tpu.iota {dimensions = array<i32: 1>} : vector<256x128xi32>
    %c0_31 = arith.constant 0 : index
    %c0_32 = arith.constant 0 : index
    %46 = vector.load %arg4[%c0_31, %c0_32] : memref<256x1xi32, #tpu.memory_space<vmem>>, vector<256x1xi32>
    %47 = vector.broadcast %46 : vector<256x1xi32> to vector<256x128xi32>
    %48 = arith.cmpi eq, %45, %47 : vector<256x128xi32>
    %49 = arith.extui %48 : vector<256x128xi1> to vector<256x128xi32>
    %50 = arith.sitofp %49 : vector<256x128xi32> to vector<256x128xf32>
    %c0_33 = arith.constant 0 : index
    %c0_34 = arith.constant 0 : index
    %51 = vector.load %arg16[%c0_33, %c0_34] : memref<4x128xf32, #tpu.memory_space<vmem>>, vector<4x128xf32>
    %cst_35 = arith.constant dense<0.000000e+00> : vector<4x128xf32>
    %52 = tpu.matmul %44, %50, %cst_35 {dimension_numbers = #tpu.dot_dimension_numbers<[1], [0], [0], [1], [0, 0, 1, 1], [], []>} : vector<4x256xf32>, vector<256x128xf32>, vector<4x128xf32> -> vector<4x128xf32>
    %53 = arith.addf %51, %52 : vector<4x128xf32>
    %c0_36 = arith.constant 0 : index
    %c0_37 = arith.constant 0 : index
    %54 = vector.load %arg16[%c0_36, %c0_37] : memref<4x128xf32, #tpu.memory_space<vmem>>, vector<4x128xf32>
    tpu.vector_store %arg16[%c0_36, %c0_37], %53 {strides = array<i32>} : memref<4x128xf32, #tpu.memory_space<vmem>>, vector<4x128xf32>,
    %c0_i32_38 = arith.constant 0 : i32
    %55 = arith.cmpi eq, %arg0, %c0_i32_38 : i32
    %56 = arith.extui %55 : i1 to i32
    %c0_i32_39 = arith.constant 0 : i32
    %57 = arith.cmpi ne, %56, %c0_i32_39 : i32
    scf.if %57 {
      %c0_40 = arith.constant 0 : index
      %c0_41 = arith.constant 0 : index
      %58 = vector.load %arg16[%c0_40, %c0_41] : memref<4x128xf32, #tpu.memory_space<vmem>>, vector<4x128xf32>
      %c0_42 = arith.constant 0 : index
      %c0_43 = arith.constant 0 : index
      %59 = vector.load %arg14[%c0_42, %c0_43] : memref<1x128xf32, #tpu.memory_space<vmem>>, vector<1x128xf32>
      %60 = vector.broadcast %59 : vector<1x128xf32> to vector<4x128xf32>
      %61 = arith.mulf %58, %60 : vector<4x128xf32>
      %c0_44 = arith.constant 0 : index
      %c0_45 = arith.constant 0 : index
      %62 = vector.load %arg15[%c0_44, %c0_45] : memref<4x128xf32, #tpu.memory_space<vmem>>, vector<4x128xf32>
      tpu.vector_store %arg15[%c0_44, %c0_45], %61 {strides = array<i32>} : memref<4x128xf32, #tpu.memory_space<vmem>>, vector<4x128xf32>,
    } else {
    }
    return
  }
  func.func @transform_0(%arg0: i32) -> (i32, i32) {
    %c0_i32 = arith.constant 0 : i32
    %c0_i32_0 = arith.constant 0 : i32
    %c0_i32_1 = arith.constant 0 : i32
    return %c0_i32, %c0_i32_0 : i32, i32
  }
  func.func @transform_1(%arg0: i32) -> (i32, i32) {
    %c0_i32 = arith.constant 0 : i32
    %c0_i32_0 = arith.constant 0 : i32
    return %c0_i32, %arg0 : i32, i32
  }
  func.func @transform_2(%arg0: i32) -> (i32, i32) {
    %c0_i32 = arith.constant 0 : i32
    %c0_i32_0 = arith.constant 0 : i32
    return %c0_i32, %arg0 : i32, i32
  }
  func.func @transform_3(%arg0: i32) -> (i32, i32) {
    %c0_i32 = arith.constant 0 : i32
    %c0_i32_0 = arith.constant 0 : i32
    return %arg0, %c0_i32 : i32, i32
  }
  func.func @transform_4(%arg0: i32) -> (i32, i32) {
    %c0_i32 = arith.constant 0 : i32
    %c0_i32_0 = arith.constant 0 : i32
    %c0_i32_1 = arith.constant 0 : i32
    return %c0_i32, %c0_i32_0 : i32, i32
  }
  func.func @transform_5(%arg0: i32) -> (i32, i32) {
    %c0_i32 = arith.constant 0 : i32
    %c0_i32_0 = arith.constant 0 : i32
    %c0_i32_1 = arith.constant 0 : i32
    return %c0_i32, %c0_i32_0 : i32, i32
  }
  func.func @transform_6(%arg0: i32) -> (i32, i32) {
    %c0_i32 = arith.constant 0 : i32
    %c0_i32_0 = arith.constant 0 : i32
    %c0_i32_1 = arith.constant 0 : i32
    return %c0_i32, %c0_i32_0 : i32, i32
  }
  func.func @transform_7(%arg0: i32) -> (i32, i32) {
    %c0_i32 = arith.constant 0 : i32
    %c0_i32_0 = arith.constant 0 : i32
    %c0_i32_1 = arith.constant 0 : i32
    return %c0_i32, %c0_i32_0 : i32, i32
  }
  func.func @transform_8(%arg0: i32) -> (i32, i32) {
    %c0_i32 = arith.constant 0 : i32
    %c0_i32_0 = arith.constant 0 : i32
    %c0_i32_1 = arith.constant 0 : i32
    return %c0_i32, %c0_i32_0 : i32, i32
  }
  func.func @transform_9(%arg0: i32) -> (i32, i32) {
    %c0_i32 = arith.constant 0 : i32
    %c0_i32_0 = arith.constant 0 : i32
    %c0_i32_1 = arith.constant 0 : i32
    return %c0_i32, %c0_i32_0 : i32, i32
  }
  func.func @transform_10(%arg0: i32) -> (i32, i32) {
    %c0_i32 = arith.constant 0 : i32
    %c0_i32_0 = arith.constant 0 : i32
    %c0_i32_1 = arith.constant 0 : i32
    return %c0_i32, %c0_i32_0 : i32, i32
  }
  func.func @transform_11(%arg0: i32) -> (i32, i32) {
    %c0_i32 = arith.constant 0 : i32
    %c0_i32_0 = arith.constant 0 : i32
    %c0_i32_1 = arith.constant 0 : i32
    return %c0_i32, %c0_i32_0 : i32, i32
  }
  func.func @transform_12(%arg0: i32) -> (i32, i32) {
    %c0_i32 = arith.constant 0 : i32
    %c0_i32_0 = arith.constant 0 : i32
    %c0_i32_1 = arith.constant 0 : i32
    return %c0_i32, %c0_i32_0 : i32, i32
  }
  func.func @transform_13(%arg0: i32) -> (i32, i32) {
    %c0_i32 = arith.constant 0 : i32
    %c0_i32_0 = arith.constant 0 : i32
    %c0_i32_1 = arith.constant 0 : i32
    return %c0_i32, %c0_i32_0 : i32, i32
  }
  func.func @transform_14(%arg0: i32) -> (i32, i32) {
    %c0_i32 = arith.constant 0 : i32
    %c0_i32_0 = arith.constant 0 : i32
    %c0_i32_1 = arith.constant 0 : i32
    return %c0_i32, %c0_i32_0 : i32, i32
  }
}

</mosaic_0001>

<bundles_post_ra>
// kernel: _lambda_.2
= control target key start
LH: loop header
LB: loop body
LE: loop exit
PB: predicated region body
PF: predicated region fallthrough
CT: control target
= control target key end

     0   :  { %v67_v0 = vlaneseq  ;;  %v1487_v1 = vmov 0   ;;  %v1488_v5 = vmov 0.0   ;;  %v1489_v19 = vmov 1.0   ;;  %s2094_s4 = inlined_call_operand.vmem [shape: f32[4,1], index: 4, kind: input, shape index: {}]   ;;  %s2095_s5 = inlined_call_operand.vmem [shape: f32[4,1], index: 5, kind: input, shape index: {}]   ;;  %s2096_s8 = inlined_call_operand.vmem [shape: f32[32,1], index: 8, kind: input, shape index: {}]   ;;  %s2097_s2 = inlined_call_operand.vmem [shape: s32[1,256], index: 2, kind: input, shape index: {}]   ;;  %s2098_s1 = inlined_call_operand.vmem [shape: s32[1,256], index: 1, kind: input, shape index: {}]   ;;  %s2099_s10 = inlined_call_operand.vmem [shape: f32[32,1], index: 10, kind: input, shape index: {}]   ;;  %s2100_s3 = inlined_call_operand.vmem [shape: s32[256,1], index: 3, kind: input, shape index: {}]   ;;  %s2101_s12 = inlined_call_operand.vmem [shape: f32[2,1], index: 12, kind: input, shape index: {}]   ;;  %s2102_s0 = inlined_call_operand.vmem [shape: f32[4,128], index: 0, kind: input, shape index: {}]   ;;  %s2103_s7 = inlined_call_operand.vmem [shape: f32[32,4], index: 7, kind: input, shape index: {}]   ;;  %s2104_s6 = inlined_call_operand.vmem [shape: f32[32,4], index: 6, kind: input, shape index: {}]   ;;  %s2105_s9 = inlined_call_operand.vmem [shape: f32[32,32], index: 9, kind: input, shape index: {}]   ;;  %s2106_s11 = inlined_call_operand.vmem [shape: f32[2,32], index: 11, kind: input, shape index: {}]   ;;  %s2107_s13 = inlined_call_operand.vmem [shape: f32[1,128], index: 13, kind: input, shape index: {}]   ;;  %s2108_s14 = inlined_call_operand.vmem [shape: f32[2,128], index: 14, kind: output, shape index: {}]  }
   0x1   :  { %1485 = vset.pattern.permute.xlu0 %v1487_v1  ;;  %v53_v2 = vld [vmem:[%s2094_s4] sm:$0xf]  ;;  %1486 = vset.pattern.permute.xlu1 %v1487_v1  ;;  %51 = vst [vmem:[#allocation2] sm:$0x3] %v1488_v5  ;;  %v661_v8 = vld [vmem:[%s2096_s8 + $0x8] sm:$0xff]  ;;  %v707_v18 = vld [vmem:[%s2099_s10 + $0x18] sm:$0xff] }
   0x2   :  { %56 = vperm.xlu0 %1485, %v53_v2   ;;  %v1569_v3 = vshrl.u32 %v67_v0, 7  ;;  %v60_v4 = vld [vmem:[%s2095_s5] sm:$0xf]  ;;  %358 = vmatprep.mubr.f32.mxu0 %v1488_v5  ;;  %v705_v22 = vld [vmem:[%s2099_s10 + $0x8] sm:$0xff]  ;;  %v954_v25 = vld [vmem:[%s2100_s3 + $0xf8] sm:$0xff] }
   0x3   :  { %429 = vmatprep.mubr.f32.mxu1 %v1488_v5  ;;  %v84_v10 = vld [vmem:[%s2097_s2] sm:$0x3]  ;;  %v953_v27 = vld [vmem:[%s2100_s3 + $0xf0] sm:$0xff]  ;;  %v952_v30 = vld [vmem:[%s2100_s3 + $0xe8] sm:$0xff] }
   0x4   :  { %v91_v6 = vsub.s32 1, %v1569_v3  ;;  %v87_v7 = vsub.s32 0, %v1569_v3  ;;  %v83_v9 = vadd.s32 120, %v1569_v3  ;;  %v189_v11 = vld [vmem:[%s2098_s1] sm:$0x3]  ;;  %v82_v12 = vadd.s32 112, %v1569_v3 }
   0x5   :  { %v81_v13 = vadd.s32 104, %v1569_v3  ;;  %v80_v20 = vadd.s32 96, %v1569_v3  ;;  %v79_v21 = vadd.s32 88, %v1569_v3  ;;  %v78_v23 = vadd.s32 80, %v1569_v3  ;;  %v951_v33 = vld [vmem:[%s2100_s3 + $0xe0] sm:$0xff]  ;;  %v950_v36 = vld [vmem:[%s2100_s3 + $0xd8] sm:$0xff] }
   0x6   :  { %63 = vperm.xlu0 %1485, %v60_v4   ;;  %v1591_v14 = vrot.slane %v84_v10, %v91_v6  ;;  %v1593_v15 = vrot.slane %v189_v11, %v91_v6  ;;  %v1595_v16 = vrot.slane %v84_v10, %v87_v7  ;;  %v1597_v17 = vrot.slane %v189_v11, %v87_v7  ;;  %v949_v38 = vld [vmem:[%s2100_s3 + $0xd0] sm:$0xff]  ;;  %v948_v39 = vld [vmem:[%s2100_s3 + $0xc8] sm:$0xff]  ;;  %v663_v40 = vld [vmem:[%s2096_s8 + $0x18] sm:$0xff] }
   0x7   :  { %v77_v24 = vadd.s32 72, %v1569_v3  ;;  %v76_v26 = vadd.s32 64, %v1569_v3  ;;  %v75_v28 = vadd.s32 56, %v1569_v3  ;;  %v74_v29 = vadd.s32 48, %v1569_v3  ;;  %v947_v41 = vld [vmem:[%s2100_s3 + $0xc0] sm:$0xff]  ;;  %681 = vperm.xlu1 %1486, %v663_v40   ;;  %v662_v42 = vld [vmem:[%s2096_s8 + $0x10] sm:$0xff] }
   0x8   :  { %vm124_vm0 = vcmp.eq.s32.totalorder %v83_v9, %v1591_v14  ;;  %vm229_vm1 = vcmp.eq.s32.totalorder %v83_v9, %v1593_v15  ;;  %vm123_vm2 = vcmp.eq.s32.totalorder %v83_v9, %v1595_v16  ;;  %vm228_vm3 = vcmp.eq.s32.totalorder %v83_v9, %v1597_v17  ;;  %v946_v43 = vld [vmem:[%s2100_s3 + $0xb8] sm:$0xff]  ;;  %v660_v44 = vld [vmem:[%s2096_s8] sm:$0xff]  ;;  %v945_v45 = vld [vmem:[%s2100_s3 + $0xb0] sm:$0xff] }
   0x9   :  { %1301 = vmatprep.subr.msk.mxu0 %vm124_vm0, %v1489_v19  ;;  %1333 = vmatprep.subr.msk.mxu1 %vm229_vm1, %v1489_v19  ;;  %vm122_vm4 = vcmp.eq.s32.totalorder %v82_v12, %v1591_v14  ;;  %vm227_vm5 = vcmp.eq.s32.totalorder %v82_v12, %v1593_v15  ;;  %vm121_vm6 = vcmp.eq.s32.totalorder %v82_v12, %v1595_v16  ;;  %v73_v31 = vadd.s32 40, %v1569_v3  ;;  %v706_v46 = vld [vmem:[%s2099_s10 + $0x10] sm:$0xff]  ;;  %v944_v47 = vld [vmem:[%s2100_s3 + $0xa8] sm:$0xff]  ;;  %v704_v48 = vld [vmem:[%s2099_s10] sm:$0xff] }
   0xa   :  { %671 = vperm.xlu0 %1485, %v661_v8   ;;  %1302 = vmatpush1.msk.msra.mxu0 %vm123_vm2, %v1489_v19  ;;  %vm226_vm7 = vcmp.eq.s32.totalorder %v82_v12, %v1597_v17  ;;  %vm120_vm8 = vcmp.eq.s32.totalorder %v81_v13, %v1591_v14  ;;  %vm225_vm9 = vcmp.eq.s32.totalorder %v81_v13, %v1593_v15  ;;  %v72_v32 = vadd.s32 32, %v1569_v3  ;;  %v943_v49 = vld [vmem:[%s2100_s3 + $0xa0] sm:$0xff]  ;;  %v938_v50 = vld [vmem:[%s2100_s3 + $0x78] sm:$0xff]  ;;  %v937_v52 = vld [vmem:[%s2100_s3 + $0x70] sm:$0xff] }
   0xb   :  { %1334 = vmatpush1.msk.msra.mxu1 %vm228_vm3, %v1489_v19  ;;  %1303 = vmatprep.subr.msk.mxu0 %vm122_vm4, %v1489_v19  ;;  %vm119_vm10 = vcmp.eq.s32.totalorder %v81_v13, %v1595_v16  ;;  %vm224_vm11 = vcmp.eq.s32.totalorder %v81_v13, %v1597_v17  ;;  %vm118_vm12 = vcmp.eq.s32.totalorder %v80_v20, %v1591_v14  ;;  %v71_v34 = vadd.s32 24, %v1569_v3  ;;  %v942_v51 = vld [vmem:[%s2100_s3 + $0x98] sm:$0xff]  ;;  %v941_v53 = vld [vmem:[%s2100_s3 + $0x90] sm:$0xff]  ;;  %v936_v54 = vld [vmem:[%s2100_s3 + $0x68] sm:$0xff] }
   0xc   :  { %1335 = vmatprep.subr.msk.mxu1 %vm227_vm5, %v1489_v19  ;;  %1304 = vmatpush1.msk.msra.mxu0 %vm121_vm6, %v1489_v19  ;;  %vm223_vm13 = vcmp.eq.s32.totalorder %v80_v20, %v1593_v15  ;;  %vm117_vm14 = vcmp.eq.s32.totalorder %v80_v20, %v1595_v16  ;;  %vm222_vm15 = vcmp.eq.s32.totalorder %v80_v20, %v1597_v17  ;;  %v70_v35 = vadd.s32 16, %v1569_v3  ;;  %v839_v55 = vld [vmem:[%s2101_s12] sm:$0x3]  ;;  %v924_v57 = vld [vmem:[%s2100_s3 + $0x8] sm:$0xff]  ;;  %v934_v58 = vld [vmem:[%s2100_s3 + $0x58] sm:$0xff] }
   0xd   :  { %1336 = vmatpush1.msk.msra.mxu1 %vm226_vm7, %v1489_v19  ;;  %1305 = vmatprep.subr.msk.mxu0 %vm120_vm8, %v1489_v19  ;;  %vm116_vm0 = vcmp.eq.s32.totalorder %v79_v21, %v1591_v14  ;;  %vm221_vm1 = vcmp.eq.s32.totalorder %v79_v21, %v1593_v15  ;;  %vm115_vm2 = vcmp.eq.s32.totalorder %v79_v21, %v1595_v16  ;;  %v69_v37 = vadd.s32 8, %v1569_v3  ;;  %v935_v56 = vld [vmem:[%s2100_s3 + $0x60] sm:$0xff]  ;;  %v933_v60 = vld [vmem:[%s2100_s3 + $0x50] sm:$0xff]  ;;  %v932_v61 = vld [vmem:[%s2100_s3 + $0x48] sm:$0xff] }
   0xe   :  { %725 = vperm.xlu0 %1485, %v707_v18   ;;  %1337 = vmatprep.subr.msk.mxu1 %vm225_vm9, %v1489_v19  ;;  %vm220_vm3 = vcmp.eq.s32.totalorder %v79_v21, %v1597_v17  ;;  %vm114_vm4 = vcmp.eq.s32.totalorder %v78_v23, %v1591_v14  ;;  %vm219_vm5 = vcmp.eq.s32.totalorder %v78_v23, %v1593_v15  ;;  %v923_v59 = vld [vmem:[%s2100_s3] sm:$0xff]  ;;  %v930_v63 = vld [vmem:[%s2100_s3 + $0x38] sm:$0xff]  ;;  %v929_v1 = vld [vmem:[%s2100_s3 + $0x30] sm:$0xff] }
   0xf   :  { %1306 = vmatpush1.msk.msra.mxu0 %vm119_vm10, %v1489_v19  ;;  %1338 = vmatpush1.msk.msra.mxu1 %vm224_vm11, %v1489_v19  ;;  %vm113_vm6 = vcmp.eq.s32.totalorder %v78_v23, %v1595_v16  ;;  %vm218_vm7 = vcmp.eq.s32.totalorder %v78_v23, %v1597_v17  ;;  %vm112_vm8 = vcmp.eq.s32.totalorder %v77_v24, %v1591_v14  ;;  %v931_v62 = vld [vmem:[%s2100_s3 + $0x40] sm:$0xff]  ;;  %v928_v2 = vld [vmem:[%s2100_s3 + $0x28] sm:$0xff]  ;;  %v926_v4 = vld [vmem:[%s2100_s3 + $0x18] sm:$0xff] }
  0x10   :  { %1307 = vmatprep.subr.msk.mxu0 %vm118_vm12, %v1489_v19  ;;  %1339 = vmatprep.subr.msk.mxu1 %vm223_vm13, %v1489_v19  ;;  %vm217_vm9 = vcmp.eq.s32.totalorder %v77_v24, %v1593_v15  ;;  %vm111_vm10 = vcmp.eq.s32.totalorder %v77_v24, %v1595_v16  ;;  %vm216_vm11 = vcmp.eq.s32.totalorder %v77_v24, %v1597_v17  ;;  %v925_v6 = vld [vmem:[%s2100_s3 + $0x10] sm:$0xff]  ;;  %v940_v7 = vld [vmem:[%s2100_s3 + $0x88] sm:$0xff]  ;;  %v52_v9 = vld [vmem:[%s2102_s0] sm:$0xf] }
  0x11   :  { %1308 = vmatpush1.msk.msra.mxu0 %vm117_vm14, %v1489_v19  ;;  %1340 = vmatpush1.msk.msra.mxu1 %vm222_vm15, %v1489_v19  ;;  %vm110_vm12 = vcmp.eq.s32.totalorder %v76_v26, %v1591_v14  ;;  %vm215_vm13 = vcmp.eq.s32.totalorder %v76_v26, %v1593_v15  ;;  %vm109_vm14 = vcmp.eq.s32.totalorder %v76_v26, %v1595_v16  ;;  %v939_v10 = vld [vmem:[%s2100_s3 + $0x80] sm:$0xff] }
  0x12   :  { %715 = vperm.xlu0 %1485, %v705_v22   ;;  %1309 = vmatprep.subr.msk.mxu0 %vm116_vm0, %v1489_v19  ;;  %vm214_vm15 = vcmp.eq.s32.totalorder %v76_v26, %v1597_v17  ;;  %vm108_vm0 = vcmp.eq.s32.totalorder %v75_v28, %v1591_v14 }
  0x13   :  { %1341 = vmatprep.subr.msk.mxu1 %vm221_vm1, %v1489_v19  ;;  %1310 = vmatpush1.msk.msra.mxu0 %vm115_vm2, %v1489_v19  ;;  %vm213_vm1 = vcmp.eq.s32.totalorder %v75_v28, %v1593_v15  ;;  %vm107_vm2 = vcmp.eq.s32.totalorder %v75_v28, %v1595_v16 }
  0x14   :  { %1342 = vmatpush1.msk.msra.mxu1 %vm220_vm3, %v1489_v19  ;;  %1311 = vmatprep.subr.msk.mxu0 %vm114_vm4, %v1489_v19  ;;  %vm212_vm3 = vcmp.eq.s32.totalorder %v75_v28, %v1597_v17  ;;  %vm106_vm4 = vcmp.eq.s32.totalorder %v74_v29, %v1591_v14 }
  0x15   :  { %1343 = vmatprep.subr.msk.mxu1 %vm219_vm5, %v1489_v19  ;;  %1312 = vmatpush1.msk.msra.mxu0 %vm113_vm6, %v1489_v19  ;;  %vm211_vm5 = vcmp.eq.s32.totalorder %v74_v29, %v1593_v15  ;;  %vm105_vm6 = vcmp.eq.s32.totalorder %v74_v29, %v1595_v16 }
  0x16   :  { %1049 = vperm.xlu0 %1485, %v954_v25   ;;  %1344 = vmatpush1.msk.msra.mxu1 %vm218_vm7, %v1489_v19  ;;  %vm210_vm7 = vcmp.eq.s32.totalorder %v74_v29, %v1597_v17 }
  0x17   :  { %1313 = vmatprep.subr.msk.mxu0 %vm112_vm8, %v1489_v19  ;;  %1345 = vmatprep.subr.msk.mxu1 %vm217_vm9, %v1489_v19  ;;  %vm104_vm8 = vcmp.eq.s32.totalorder %v73_v31, %v1591_v14  ;;  %vm209_vm9 = vcmp.eq.s32.totalorder %v73_v31, %v1593_v15 }
  0x18   :  { %1314 = vmatpush1.msk.msra.mxu0 %vm111_vm10, %v1489_v19  ;;  %1346 = vmatpush1.msk.msra.mxu1 %vm216_vm11, %v1489_v19  ;;  %vm103_vm10 = vcmp.eq.s32.totalorder %v73_v31, %v1595_v16  ;;  %vm208_vm11 = vcmp.eq.s32.totalorder %v73_v31, %v1597_v17 }
  0x19   :  { %1315 = vmatprep.subr.msk.mxu0 %vm110_vm12, %v1489_v19  ;;  %1347 = vmatprep.subr.msk.mxu1 %vm215_vm13, %v1489_v19  ;;  %vm102_vm12 = vcmp.eq.s32.totalorder %v72_v32, %v1591_v14  ;;  %vm207_vm13 = vcmp.eq.s32.totalorder %v72_v32, %v1593_v15 }
  0x1a   :  { %1046 = vperm.xlu0 %1485, %v953_v27   ;;  %1316 = vmatpush1.msk.msra.mxu0 %vm109_vm14, %v1489_v19  ;;  %vm101_vm14 = vcmp.eq.s32.totalorder %v72_v32, %v1595_v16 }
  0x1b   :  { %1348 = vmatpush1.msk.msra.mxu1 %vm214_vm15, %v1489_v19  ;;  %1317 = vmatprep.subr.msk.mxu0 %vm108_vm0, %v1489_v19  ;;  %vm206_vm15 = vcmp.eq.s32.totalorder %v72_v32, %v1597_v17  ;;  %vm100_vm0 = vcmp.eq.s32.totalorder %v71_v34, %v1591_v14 }
  0x1c   :  { %1349 = vmatprep.subr.msk.mxu1 %vm213_vm1, %v1489_v19  ;;  %1318 = vmatpush1.msk.msra.mxu0 %vm107_vm2, %v1489_v19  ;;  %vm205_vm1 = vcmp.eq.s32.totalorder %v71_v34, %v1593_v15  ;;  %vm99_vm2 = vcmp.eq.s32.totalorder %v71_v34, %v1595_v16 }
  0x1d   :  { %1350 = vmatpush1.msk.msra.mxu1 %vm212_vm3, %v1489_v19  ;;  %1319 = vmatprep.subr.msk.mxu0 %vm106_vm4, %v1489_v19  ;;  %vm204_vm3 = vcmp.eq.s32.totalorder %v71_v34, %v1597_v17  ;;  %vm98_vm4 = vcmp.eq.s32.totalorder %v70_v35, %v1591_v14 }
  0x1e   :  { %1043 = vperm.xlu0 %1485, %v952_v30   ;;  %1351 = vmatprep.subr.msk.mxu1 %vm211_vm5, %v1489_v19  ;;  %vm203_vm5 = vcmp.eq.s32.totalorder %v70_v35, %v1593_v15 }
  0x1f   :  { %1320 = vmatpush1.msk.msra.mxu0 %vm105_vm6, %v1489_v19  ;;  %1352 = vmatpush1.msk.msra.mxu1 %vm210_vm7, %v1489_v19  ;;  %vm97_vm6 = vcmp.eq.s32.totalorder %v70_v35, %v1595_v16  ;;  %vm202_vm7 = vcmp.eq.s32.totalorder %v70_v35, %v1597_v17 }
  0x20   :  { %1321 = vmatprep.subr.msk.mxu0 %vm104_vm8, %v1489_v19  ;;  %1353 = vmatprep.subr.msk.mxu1 %vm209_vm9, %v1489_v19  ;;  %vm96_vm8 = vcmp.eq.s32.totalorder %v69_v37, %v1591_v14  ;;  %vm201_vm9 = vcmp.eq.s32.totalorder %v69_v37, %v1593_v15 }
  0x21   :  { %1322 = vmatpush1.msk.msra.mxu0 %vm103_vm10, %v1489_v19  ;;  %1354 = vmatpush1.msk.msra.mxu1 %vm208_vm11, %v1489_v19  ;;  %vm95_vm10 = vcmp.eq.s32.totalorder %v69_v37, %v1595_v16  ;;  %vm200_vm11 = vcmp.eq.s32.totalorder %v69_v37, %v1597_v17 }
  0x22   :  { %1040 = vperm.xlu0 %1485, %v951_v33   ;;  %1323 = vmatprep.subr.msk.mxu0 %vm102_vm12, %v1489_v19  ;;  %vm94_vm12 = vcmp.eq.s32.totalorder %v1569_v3, %v1591_v14 }
  0x23   :  { %1355 = vmatprep.subr.msk.mxu1 %vm207_vm13, %v1489_v19  ;;  %1324 = vmatpush1.msk.msra.mxu0 %vm101_vm14, %v1489_v19  ;;  %vm199_vm13 = vcmp.eq.s32.totalorder %v1569_v3, %v1593_v15  ;;  %vm93_vm14 = vcmp.eq.s32.totalorder %v1569_v3, %v1595_v16 }
  0x24   :  { %1356 = vmatpush1.msk.msra.mxu1 %vm206_vm15, %v1489_v19  ;;  %1325 = vmatprep.subr.msk.mxu0 %vm100_vm0, %v1489_v19  ;;  %vm198_vm15 = vcmp.eq.s32.totalorder %v1569_v3, %v1597_v17  ;;  %v927_v3 = vld [vmem:[%s2100_s3 + $0x20] sm:$0xff]  ;;  %vm457_vm0 = vcmask 1043456  }
  0x25   :  { %1357 = vmatprep.subr.msk.mxu1 %vm205_vm1, %v1489_v19  ;;  %1326 = vmatpush1.msk.msra.mxu0 %vm99_vm2, %v1489_v19  ;;  %vm444_vm1 = vcmask 31744  }
  0x26   :  { %1037 = vperm.xlu0 %1485, %v950_v36   ;;  %1358 = vmatpush1.msk.msra.mxu1 %vm204_vm3, %v1489_v19 }
  0x27   :  { %1327 = vmatprep.subr.msk.mxu0 %vm98_vm4, %v1489_v19  ;;  %1359 = vmatprep.subr.msk.mxu1 %vm203_vm5, %v1489_v19 }
  0x28   :  { %1328 = vmatpush1.msk.msra.mxu0 %vm97_vm6, %v1489_v19  ;;  %1360 = vmatpush1.msk.msra.mxu1 %vm202_vm7, %v1489_v19 }
  0x29   :  { %1329 = vmatprep.subr.msk.mxu0 %vm96_vm8, %v1489_v19  ;;  %1361 = vmatprep.subr.msk.mxu1 %vm201_vm9, %v1489_v19 }
  0x2a   :  { %1034 = vperm.xlu0 %1485, %v949_v38   ;;  %1330 = vmatpush1.msk.msra.mxu0 %vm95_vm10, %v1489_v19 }
  0x2b   :  { %1362 = vmatpush1.msk.msra.mxu1 %vm200_vm11, %v1489_v19  ;;  %1331 = vmatprep.subr.msk.mxu0 %vm94_vm12, %v1489_v19 }
  0x2c   :  { %1363 = vmatprep.subr.msk.mxu1 %vm199_vm13, %v1489_v19  ;;  %1332 = vmatpush1.msk.msra.mxu0 %vm93_vm14, %v1489_v19 }
  0x2d   :  { %1364 = vmatpush1.msk.msra.mxu1 %vm198_vm15, %v1489_v19  ;;  %676 = vperm.xlu1 %1486, %v662_v42  }
  0x2e   :  { %1031 = vperm.xlu0 %1485, %v948_v39  }
  0x31   :  { %666 = vperm.xlu1 %1486, %v660_v44  }
  0x32   :  { %1028 = vperm.xlu0 %1485, %v947_v41  }
  0x35   :  { %720 = vperm.xlu1 %1486, %v706_v46  }
  0x36   :  { %1025 = vperm.xlu0 %1485, %v946_v43  }
  0x39   :  { %710 = vperm.xlu1 %1486, %v704_v48  }
  0x3a   :  { %1022 = vperm.xlu0 %1485, %v945_v45  }
  0x3d   :  { %1001 = vperm.xlu1 %1486, %v938_v50   ;;  %v440_v50 = vld [vmem:[%s2103_s7] sm:$0xff] }
  0x3e   :  { %1019 = vperm.xlu0 %1485, %v944_v47   ;;  %v1915_v47 = vand.u32 127, %v67_v0  ;;  %v437_v0 = vld [vmem:[%s2104_s6 + $0x8] sm:$0xff] }
  0x41   :  { %998 = vperm.xlu1 %1486, %v937_v52  }
  0x42   :  { %1016 = vperm.xlu0 %1485, %v943_v49  }
  0x45   :  { %995 = vperm.xlu1 %1486, %v936_v54   ;;  %v441_v54 = vld [vmem:[%s2103_s7 + $0x8] sm:$0xff] }
  0x46   :  { %1013 = vperm.xlu0 %1485, %v942_v51   ;;  %v436_v51 = vld [vmem:[%s2104_s6] sm:$0xff] }
  0x49   :  { %992 = vperm.xlu1 %1486, %v935_v56   ;;  %v438_v56 = vld [vmem:[%s2104_s6 + $0x10] sm:$0xff] }
  0x4a   :  { %1010 = vperm.xlu0 %1485, %v941_v53  }
  0x4d   :  { %989 = vperm.xlu1 %1486, %v934_v58  }
  0x4e   :  { %842 = vperm.xlu0 %1485, %v839_v55  }
  0x51   :  { %986 = vperm.xlu1 %1486, %v933_v60  }
  0x52   :  { %959 = vperm.xlu0 %1485, %v924_v57   ;;  %v442_v57 = vld [vmem:[%s2103_s7 + $0x10] sm:$0xff] }
  0x55   :  { %983 = vperm.xlu1 %1486, %v932_v61   ;;  %v443_v61 = vld [vmem:[%s2103_s7 + $0x18] sm:$0xff] }
  0x56   :  { %956 = vperm.xlu0 %1485, %v923_v59   ;;  %v439_v59 = vld [vmem:[%s2104_s6 + $0x18] sm:$0xff] }
  0x59   :  { %980 = vperm.xlu1 %1486, %v931_v62  }
  0x5d   :  { %977 = vperm.xlu1 %1486, %v930_v63  }
  0x61   :  { %974 = vperm.xlu1 %1486, %v929_v1  }
  0x65   :  { %971 = vperm.xlu1 %1486, %v928_v2  }
  0x69   :  { %968 = vperm.xlu1 %1486, %v927_v3  }
  0x6d   :  { %965 = vperm.xlu1 %1486, %v926_v4  }
  0x71   :  { %962 = vperm.xlu1 %1486, %v925_v6  }
  0x75   :  { %1007 = vperm.xlu1 %1486, %v940_v7  }
  0x79   :  { %1004 = vperm.xlu1 %1486, %v939_v10  }
  0x7d   :  { %v57_v8 = vpop.permute.xlu0 %56 }
  0x7e   :  { %v59_v11 = vmul.f32 %v57_v8, %v52_v9 }
  0x81   :  { %v64_v12 = vpop.permute.xlu0 %63 }
  0x82   :  { %v66_v13 = vadd.f32 %v64_v12, %v59_v11  ;;  %v1868_v14 = vpop.permute.xlu1 %681 }
  0x84   :  { %359 = vmatmul.mubr.f32.vlgmr.msra.gmra.mxu0 %v66_v13  ;;  %430 = vmatmul.mubr.f32.vlgmr.msra.gmra.mxu1 %v66_v13 }
  0x85   :  { %528 = vmatprep.mubr.f32.mxu0 %v1488_v5  ;;  %635 = vmatprep.mubr.f32.mxu1 %v1488_v5  ;;  %v1872_v16 = vpop.permute.xlu0 %671 }
  0x89   :  { %v1876_v18 = vpop.permute.xlu0 %725 }
  0x8d   :  { %v1880_v21 = vpop.permute.xlu0 %715 }
  0x91   :  { %v1050_v23 = vpop.permute.xlu0 %1049 }
  0x92   :  { %vm1082_vm3 = vcmp.eq.s32.totalorder %v1915_v47, %v1050_v23 }
  0x95   :  { %v1047_v25 = vpop.permute.xlu0 %1046 }
  0x96   :  { %vm1081_vm5 = vcmp.eq.s32.totalorder %v1915_v47, %v1047_v25 }
  0x99   :  { %v1044_v27 = vpop.permute.xlu0 %1043 }
  0x9a   :  { %vm1080_vm7 = vcmp.eq.s32.totalorder %v1915_v47, %v1044_v27 }
  0x9d   :  { %v1041_v29 = vpop.permute.xlu0 %1040 }
  0x9e   :  { %vm1079_vm9 = vcmp.eq.s32.totalorder %v1915_v47, %v1041_v29 }
  0xa1   :  { %v1886_v31 = vpop.permute.xlu0 %1037 }
  0xa2   :  { %vm1078_vm11 = vcmp.eq.s32.totalorder %v1915_v47, %v1886_v31 }
  0xa5   :  { %v1890_v33 = vpop.permute.xlu0 %1034 }
  0xa6   :  { %vm1077_vm13 = vcmp.eq.s32.totalorder %v1915_v47, %v1890_v33 }
  0xa8   :  { %v1870_v15 = vpop.permute.xlu1 %676 }
  0xa9   :  { %v1894_v35 = vpop.permute.xlu0 %1031 }
  0xaa   :  { %vm1076_vm15 = vcmp.eq.s32.totalorder %v1915_v47, %v1894_v35 }
  0xac   :  { %v1874_v17 = vpop.permute.xlu1 %666 }
  0xad   :  { %v1898_v37 = vpop.permute.xlu0 %1028 }
  0xb0   :  { %v1878_v20 = vpop.permute.xlu1 %720 }
  0xb1   :  { %v1902_v39 = vpop.permute.xlu0 %1025 }
  0xb4   :  { %v1882_v22 = vpop.permute.xlu1 %710 }
  0xb5   :  { %v1906_v41 = vpop.permute.xlu0 %1022 }
  0xb8   :  { %v1002_v24 = vpop.permute.xlu1 %1001 }
  0xb9   :  { %v1910_v43 = vpop.permute.xlu0 %1019  ;;  %vm1066_vm2 = vcmp.eq.s32.totalorder %v1915_v47, %v1002_v24 }
  0xbc   :  { %v999_v26 = vpop.permute.xlu1 %998 }
  0xbd   :  { %v1923_v52 = vpop.permute.xlu0 %1016  ;;  %vm1065_vm4 = vcmp.eq.s32.totalorder %v1915_v47, %v999_v26 }
  0xc0   :  { %v996_v28 = vpop.permute.xlu1 %995 }
  0xc1   :  { %vm1064_vm6 = vcmp.eq.s32.totalorder %v1915_v47, %v996_v28  ;;  %v1946_v55 = vpop.permute.xlu0 %1013 }
  0xc4   :  { %v1884_v30 = vpop.permute.xlu1 %992 }
  0xc5   :  { %vm1063_vm8 = vcmp.eq.s32.totalorder %v1915_v47, %v1884_v30  ;;  %v1011_v60 = vpop.permute.xlu0 %1010 }
  0xc8   :  { %v1888_v32 = vpop.permute.xlu1 %989 }
  0xc9   :  { %vm1062_vm10 = vcmp.eq.s32.totalorder %v1915_v47, %v1888_v32  ;;  %v2006_v63 = vpop.permute.xlu0 %842 }
  0xcc   :  { %v1892_v34 = vpop.permute.xlu1 %986 }
  0xcd   :  { %vm1061_vm12 = vcmp.eq.s32.totalorder %v1915_v47, %v1892_v34  ;;  %v960_v2 = vpop.permute.xlu0 %959 }
  0xd0   :  { %v1896_v36 = vpop.permute.xlu1 %983 }
  0xd1   :  { %vm1060_vm14 = vcmp.eq.s32.totalorder %v1915_v47, %v1896_v36  ;;  %v957_v4 = vpop.permute.xlu0 %956 }
  0xd4   :  { %v1900_v38 = vpop.permute.xlu1 %980 }
  0xd8   :  { %v1904_v40 = vpop.permute.xlu1 %977 }
  0xdc   :  { %v1908_v42 = vpop.permute.xlu1 %974 }
  0xe0   :  { %v1912_v44 = vpop.permute.xlu1 %971 }
  0xe4   :  { %v1935_v53 = vpop.permute.xlu1 %968 }
  0xe8   :  { %v966_v58 = vpop.permute.xlu1 %965 }
  0xec   :  { %v963_v62 = vpop.permute.xlu1 %962 }
  0xf0   :  { %v1008_v1 = vpop.permute.xlu1 %1007 }
  0xf4   :  { %v1005_v3 = vpop.permute.xlu1 %1004 }
 0x144   :  { %v360_v45 = vpop.f32.mrf.mxu0  ;;  %v431_v46 = vpop.f32.mrf.mxu1 }
 0x146   :  { %v362_v48 = vpop.f32.mrf.mxu0  ;;  %v433_v49 = vpop.f32.mrf.mxu1 }
 0x147   :  { %1365 = vmatprep.subr.msk.mxu0 %vm457_vm0, %v433_v49  ;;  %1371 = vmatprep.subr.msk.mxu1 %vm457_vm0, %v362_v48 }
 0x148   :  { %1366 = vmatpush1.msk.msra.mxu0 %vm457_vm0, %v431_v46  ;;  %1372 = vmatpush1.msk.msra.mxu1 %vm457_vm0, %v360_v45  ;;  %vm1059_vm0 = vcmp.eq.s32.totalorder %v1915_v47, %v1900_v38 }
 0x149   :  { %1367 = vmatmul.mubr.msk.f32.vlgmr.msra.gmra.mxu0 %vm444_vm1, %v440_v50  ;;  %1373 = vmatmul.mubr.msk.f32.vlgmr.msra.gmra.mxu1 %vm444_vm1, %v436_v51 }
 0x14a   :  { %1447 = vmatprep.subr.msk.mxu0 %vm1082_vm3, %v1489_v19  ;;  %534 = vmatprep.mubr.f32.mxu0 %v1488_v5  ;;  %vm1058_vm3 = vcmp.eq.s32.totalorder %v1915_v47, %v1904_v40 }
 0x14b   :  { %1448 = vmatpush3.msk.msra.mxu0 %vm1066_vm2, %v1489_v19  ;;  %641 = vmatprep.mubr.f32.mxu1 %v1488_v5  ;;  %vm1075_vm2 = vcmp.eq.s32.totalorder %v1915_v47, %v1898_v37 }
 0x14c   :  { %1449 = vmatprep.subr.msk.mxu0 %vm1081_vm5, %v1489_v19  ;;  %vm1073_vm5 = vcmp.eq.s32.totalorder %v1915_v47, %v1906_v41 }
 0x14d   :  { %1450 = vmatpush3.msk.msra.mxu0 %vm1065_vm4, %v1489_v19  ;;  %1374 = vmatmul.mubr.msk.f32.gmra.mxu1 %vm444_vm1, %v437_v0  ;;  %vm1074_vm4 = vcmp.eq.s32.totalorder %v1915_v47, %v1902_v39  ;;  %v703_v0 = vld [vmem:[%s2105_s9 + $0x18] sm:$0xff] }
 0x14e   :  { %1368 = vmatmul.mubr.msk.f32.gmra.mxu0 %vm444_vm1, %v441_v54  ;;  %1451 = vmatprep.subr.msk.mxu0 %vm1080_vm7, %v1489_v19  ;;  %vm1072_vm7 = vcmp.eq.s32.totalorder %v1915_v47, %v1910_v43 }
 0x14f   :  { %1452 = vmatpush3.msk.msra.mxu0 %vm1064_vm6, %v1489_v19  ;;  %540 = vmatprep.mubr.f32.mxu0 %v1488_v5  ;;  %vm1056_vm6 = vcmp.eq.s32.totalorder %v1915_v47, %v1912_v44 }
 0x150   :  { %1453 = vmatprep.subr.msk.mxu0 %vm1079_vm9, %v1489_v19  ;;  %647 = vmatprep.mubr.f32.mxu1 %v1488_v5  ;;  %vm1071_vm9 = vcmp.eq.s32.totalorder %v1915_v47, %v1923_v52  ;;  %v702_v52 = vld [vmem:[%s2105_s9 + $0x10] sm:$0xff] }
 0x151   :  { %1454 = vmatpush3.msk.msra.mxu0 %vm1063_vm8, %v1489_v19  ;;  %1375 = vmatmul.mubr.msk.f32.gmra.mxu1 %vm444_vm1, %v438_v56  ;;  %vm1055_vm8 = vcmp.eq.s32.totalorder %v1915_v47, %v1935_v53 }
 0x152   :  { %1369 = vmatmul.mubr.msk.f32.gmra.mxu0 %vm444_vm1, %v442_v57  ;;  %1455 = vmatprep.subr.msk.mxu0 %vm1078_vm11, %v1489_v19  ;;  %vm1070_vm11 = vcmp.eq.s32.totalorder %v1915_v47, %v1946_v55 }
 0x153   :  { %1456 = vmatpush3.msk.msra.mxu0 %vm1062_vm10, %v1489_v19  ;;  %546 = vmatprep.mubr.f32.mxu0 %v1488_v5  ;;  %vm1054_vm10 = vcmp.eq.s32.totalorder %v1915_v47, %v966_v58 }
 0x154   :  { %1457 = vmatprep.subr.msk.mxu0 %vm1077_vm13, %v1489_v19  ;;  %653 = vmatprep.mubr.f32.mxu1 %v1488_v5  ;;  %vm1069_vm13 = vcmp.eq.s32.totalorder %v1915_v47, %v1011_v60 }
 0x155   :  { %1458 = vmatpush3.msk.msra.mxu0 %vm1061_vm12, %v1489_v19  ;;  %1376 = vmatmul.mubr.msk.f32.gmra.mxu1 %vm444_vm1, %v439_v59  ;;  %vm1053_vm12 = vcmp.eq.s32.totalorder %v1915_v47, %v963_v62 }
 0x156   :  { %1370 = vmatmul.mubr.msk.f32.gmra.mxu0 %vm444_vm1, %v443_v61  ;;  %1459 = vmatprep.subr.msk.mxu0 %vm1076_vm15, %v1489_v19  ;;  %vm1057_vm1 = vcmp.eq.s32.totalorder %v1915_v47, %v1908_v42  ;;  %vm1067_vm15 = vcmp.eq.s32.totalorder %v1915_v47, %v1005_v3 }
 0x157   :  { %1460 = vmatpush3.msk.msra.mxu0 %vm1060_vm14, %v1489_v19  ;;  %805 = vmatprep.mubr.f32.mxu1 %v1488_v5  ;;  %vm1068_vm14 = vcmp.eq.s32.totalorder %v1915_v47, %v1008_v1 }
 0x158   :  { %1461 = vmatprep.subr.msk.mxu0 %vm1075_vm2, %v1489_v19  ;;  %vm1051_vm2 = vcmp.eq.s32.totalorder %v1915_v47, %v957_v4 }
 0x159   :  { %1462 = vmatpush3.msk.msra.mxu0 %vm1059_vm0, %v1489_v19  ;;  %vm1052_vm0 = vcmp.eq.s32.totalorder %v1915_v47, %v960_v2 }
 0x15a   :  { %1463 = vmatprep.subr.msk.mxu0 %vm1074_vm4, %v1489_v19 }
 0x15b   :  { %1464 = vmatpush3.msk.msra.mxu0 %vm1058_vm3, %v1489_v19  ;;  %vm728_vm3 = vcmask 261120  }
 0x15c   :  { %1465 = vmatprep.subr.msk.mxu0 %vm1073_vm5, %v1489_v19 }
 0x15d   :  { %1466 = vmatpush3.msk.msra.mxu0 %vm1057_vm1, %v1489_v19 }
 0x15e   :  { %1467 = vmatprep.subr.msk.mxu0 %vm1072_vm7, %v1489_v19 }
 0x15f   :  { %1468 = vmatpush3.msk.msra.mxu0 %vm1056_vm6, %v1489_v19 }
 0x160   :  { %1469 = vmatprep.subr.msk.mxu0 %vm1071_vm9, %v1489_v19 }
 0x161   :  { %1470 = vmatpush3.msk.msra.mxu0 %vm1055_vm8, %v1489_v19 }
 0x162   :  { %1471 = vmatprep.subr.msk.mxu0 %vm1070_vm11, %v1489_v19 }
 0x163   :  { %1472 = vmatpush3.msk.msra.mxu0 %vm1054_vm10, %v1489_v19 }
 0x164   :  { %1473 = vmatprep.subr.msk.mxu0 %vm1069_vm13, %v1489_v19 }
 0x165   :  { %1474 = vmatpush3.msk.msra.mxu0 %vm1053_vm12, %v1489_v19 }
 0x166   :  { %1475 = vmatprep.subr.msk.mxu0 %vm1068_vm14, %v1489_v19 }
 0x167   :  { %1476 = vmatpush3.msk.msra.mxu0 %vm1052_vm0, %v1489_v19 }
 0x168   :  { %1477 = vmatprep.subr.msk.mxu0 %vm1067_vm15, %v1489_v19 }
 0x169   :  { %1478 = vmatpush3.msk.msra.mxu0 %vm1051_vm2, %v1489_v19 }
 0x209   :  { %v530_v6 = vpop.f32.mrf.mxu0  ;;  %v637_v7 = vpop.f32.mrf.mxu1 }
 0x20a   :  { %v638_v40 = vadd.f32 %v637_v7, %v530_v6 }
 0x20b   :  { %v532_v8 = vpop.f32.mrf.mxu0  ;;  %v639_v9 = vpop.f32.mrf.mxu1 }
 0x20c   :  { %v640_v37 = vadd.f32 %v639_v9, %v532_v8  ;;  %v684_v48 = vadd.f32 %v1874_v17, %v638_v40 }
 0x20d   :  { %v643_v10 = vpop.f32.mrf.mxu1 }
 0x20e   :  { %v536_v11 = vpop.f32.mrf.mxu0  ;;  %v685_v46 = vadd.f32 %v1874_v17, %v640_v37  ;;  %v701_v17 = vld [vmem:[%s2105_s9 + $0x8] sm:$0xff] }
 0x20f   :  { %v645_v12 = vpop.f32.mrf.mxu1  ;;  %v644_v35 = vadd.f32 %v643_v10, %v536_v11 }
 0x210   :  { %v538_v13 = vpop.f32.mrf.mxu0  ;;  %v693_v51 = vmax.f32 %v685_v46, 0.0 }
 0x211   :  { %v649_v23 = vpop.f32.mrf.mxu1  ;;  %v646_v19 = vadd.f32 %v645_v12, %v538_v13  ;;  %v686_v44 = vadd.f32 %v1872_v16, %v644_v35 }
 0x212   :  { %v542_v24 = vpop.f32.mrf.mxu0 }
 0x213   :  { %v651_v25 = vpop.f32.mrf.mxu1  ;;  %v650_v32 = vadd.f32 %v649_v23, %v542_v24  ;;  %v687_v42 = vadd.f32 %v1872_v16, %v646_v19  ;;  %v700_v16 = vld [vmem:[%s2105_s9] sm:$0xff] }
 0x214   :  { %v544_v26 = vpop.f32.mrf.mxu0 }
 0x215   :  { %v655_v27 = vpop.f32.mrf.mxu1  ;;  %v652_v29 = vadd.f32 %v651_v25, %v544_v26  ;;  %v688_v41 = vadd.f32 %v1870_v15, %v650_v32  ;;  %v695_v50 = vmax.f32 %v687_v42, 0.0  ;;  %v1446_v32 = vld [vmem:[%s2107_s13] ss:$0 sm:$0xff] }
 0x216   :  { %v548_v28 = vpop.f32.mrf.mxu0 }
 0x217   :  { %v656_v30 = vadd.f32 %v655_v27, %v548_v28  ;;  %v657_v31 = vpop.f32.mrf.mxu1  ;;  %v689_v38 = vadd.f32 %v1870_v15, %v652_v29  ;;  %v696_v49 = vmax.f32 %v688_v41, 0.0  ;;  %v692_v15 = vmax.f32 %v684_v48, 0.0  ;;  %v1147_v28 = vld [vmem:[#allocation2] sm:$0x3] }
 0x218   :  { %v550_v33 = vpop.f32.mrf.mxu0 }
 0x219   :  { %v658_v34 = vadd.f32 %v657_v31, %v550_v33  ;;  %v690_v36 = vadd.f32 %v1868_v14, %v656_v30  ;;  %v697_v47 = vmax.f32 %v689_v38, 0.0 }
 0x21b   :  { %v691_v39 = vadd.f32 %v1868_v14, %v658_v34  ;;  %v698_v45 = vmax.f32 %v690_v36, 0.0  ;;  %v694_v14 = vmax.f32 %v686_v44, 0.0 }
 0x21d   :  { %v699_v43 = vmax.f32 %v691_v39, 0.0 }
 0x21f   :  { %765 = vmatprep.subr.mxu1 %v699_v43 }
 0x220   :  { %766 = vmatpush1.msra.mxu1 %v698_v45 }
 0x221   :  { %767 = vmatprep.subr.mxu1 %v697_v47 }
 0x222   :  { %768 = vmatpush1.msra.mxu1 %v696_v49 }
 0x223   :  { %769 = vmatprep.subr.mxu1 %v695_v50 }
 0x224   :  { %770 = vmatpush1.msra.mxu1 %v694_v14 }
 0x225   :  { %771 = vmatprep.subr.mxu1 %v693_v51 }
 0x226   :  { %772 = vmatpush1.msra.mxu1 %v692_v15 }
 0x227   :  { %1377 = vmatmul.mubr.msk.f32.vlgmr.msra.gmra.mxu1 %vm728_vm3, %v700_v16 }
 0x228   :  { %811 = vmatprep.mubr.f32.mxu1 %v1488_v5 }
 0x22b   :  { %1378 = vmatmul.mubr.msk.f32.gmra.mxu1 %vm728_vm3, %v701_v17 }
 0x22c   :  { %817 = vmatprep.mubr.f32.mxu1 %v1488_v5 }
 0x22f   :  { %1379 = vmatmul.mubr.msk.f32.gmra.mxu1 %vm728_vm3, %v702_v52 }
 0x230   :  { %823 = vmatprep.mubr.f32.mxu1 %v1488_v5 }
 0x233   :  { %1380 = vmatmul.mubr.msk.f32.gmra.mxu1 %vm728_vm3, %v703_v0 }
 0x234   :  { %912 = vmatprep.mubr.f32.mxu1 %v1488_v5 }
 0x2e7   :  { %v807_v53 = vpop.f32.mrf.mxu1 }
 0x2e8   :  { %v808_v9 = vadd.f32 %v807_v53, %v1882_v22 }
 0x2e9   :  { %v809_v54 = vpop.f32.mrf.mxu1 }
 0x2ea   :  { %v810_v7 = vadd.f32 %v809_v54, %v1882_v22 }
 0x2eb   :  { %v813_v55 = vpop.f32.mrf.mxu1 }
 0x2ec   :  { %v814_v5 = vadd.f32 %v813_v55, %v1880_v21 }
 0x2ed   :  { %v815_v56 = vpop.f32.mrf.mxu1 }
 0x2ee   :  { %v816_v3 = vadd.f32 %v815_v56, %v1880_v21  ;;  %v832_v12 = vmax.f32 %v814_v5, 0.0  ;;  %v838_v21 = vld [vmem:[%s2106_s11] sm:$0x3] }
 0x2ef   :  { %v819_v57 = vpop.f32.mrf.mxu1 }
 0x2f0   :  { %v820_v2 = vadd.f32 %v819_v57, %v1878_v20  ;;  %v833_v11 = vmax.f32 %v816_v3, 0.0 }
 0x2f1   :  { %v821_v58 = vpop.f32.mrf.mxu1 }
 0x2f2   :  { %v822_v62 = vadd.f32 %v821_v58, %v1878_v20  ;;  %v834_v10 = vmax.f32 %v820_v2, 0.0  ;;  %v830_v20 = vmax.f32 %v808_v9, 0.0 }
 0x2f3   :  { %v825_v59 = vpop.f32.mrf.mxu1 }
 0x2f4   :  { %v826_v60 = vadd.f32 %v825_v59, %v1876_v18  ;;  %v835_v8 = vmax.f32 %v822_v62, 0.0 }
 0x2f5   :  { %v827_v61 = vpop.f32.mrf.mxu1 }
 0x2f6   :  { %v828_v1 = vadd.f32 %v827_v61, %v1876_v18  ;;  %v836_v6 = vmax.f32 %v826_v60, 0.0  ;;  %v831_v18 = vmax.f32 %v810_v7, 0.0 }
 0x2f8   :  { %v837_v4 = vmax.f32 %v828_v1, 0.0 }
 0x2fa   :  { %872 = vmatprep.subr.mxu1 %v837_v4 }
 0x2fb   :  { %873 = vmatpush1.msra.mxu1 %v836_v6 }
 0x2fc   :  { %874 = vmatprep.subr.mxu1 %v835_v8 }
 0x2fd   :  { %875 = vmatpush1.msra.mxu1 %v834_v10 }
 0x2fe   :  { %876 = vmatprep.subr.mxu1 %v833_v11 }
 0x2ff   :  { %877 = vmatpush1.msra.mxu1 %v832_v12 }
 0x300   :  { %878 = vmatprep.subr.mxu1 %v831_v18 }
 0x301   :  { %879 = vmatpush1.msra.mxu1 %v830_v20 }
 0x302   :  { %1381 = vmatmul.mubr.msk.f32.vlgmr.msra.gmra.mxu1 %vm728_vm3, %v838_v21 }
 0x3c2   :  { %v914_v13 = vpop.f32.mrf.mxu1 }
 0x3c3   :  { %v915_v22 = vadd.f32 %v914_v13, %v2006_v63 }
 0x3c4   :  { %v916_v23 = vpop.f32.mrf.mxu1 }
 0x3c5   :  { %v917_v24 = vadd.f32 %v916_v23, %v2006_v63  ;;  %v919_v26 = vmax.f32 %v915_v22, 0.0 }
 0x3c7   :  { %v920_v25 = vmax.f32 %v917_v24, 0.0 }
 0x3c9   :  { %1212 = vmatprep.mubr.f32.mxu0 %v920_v25 }
 0x3ca   :  { %1213 = vmatmul.mubr.f32.vlgmr.msra.gmra.mxu0 %v919_v26 }
 0x48a   :  { %v1479_v27 = vpop.f32.mrf.mxu0 }
 0x48c   :  { %v1480_v29 = vpop.f32.mrf.mxu0 }
 0x48d   :  { %v1481_v30 = vadd.f32 %v1480_v29, %v1479_v27 }
 0x48f   :  { %v1218_v31 = vadd.f32 %v1481_v30, %v1147_v28 }
 0x491   :  { %1219 = vst [vmem:[#allocation2] sm:$0x3] %v1218_v31 }
 0x498   :  { %v1223_v33 = vld [vmem:[#allocation2] sm:$0x3] }
 0x499   :  { %v1231_v19 = vmul.f32 %v1446_v32, %v1223_v33 }
 0x49b   :  { %1232 = vst [vmem:[%s2108_s14] sm:$0x3] %v1231_v19 }

// kernel: _lambda_.3
= control target key start
LH: loop header
LB: loop body
LE: loop exit
PB: predicated region body
PF: predicated region fallthrough
CT: control target
= control target key end

     0   :  { %v67_v0 = vlaneseq  ;;  %v1485_v1 = vmov 0   ;;  %v1486_v5 = vmov 0.0   ;;  %v1487_v19 = vmov 1.0   ;;  %s2092_s4 = inlined_call_operand.vmem [shape: f32[2,1], index: 4, kind: input, shape index: {}]   ;;  %s2093_s5 = inlined_call_operand.vmem [shape: f32[2,1], index: 5, kind: input, shape index: {}]   ;;  %s2094_s8 = inlined_call_operand.vmem [shape: f32[32,1], index: 8, kind: input, shape index: {}]   ;;  %s2095_s2 = inlined_call_operand.vmem [shape: s32[1,256], index: 2, kind: input, shape index: {}]   ;;  %s2096_s1 = inlined_call_operand.vmem [shape: s32[1,256], index: 1, kind: input, shape index: {}]   ;;  %s2097_s10 = inlined_call_operand.vmem [shape: f32[32,1], index: 10, kind: input, shape index: {}]   ;;  %s2098_s3 = inlined_call_operand.vmem [shape: s32[256,1], index: 3, kind: input, shape index: {}]   ;;  %s2099_s12 = inlined_call_operand.vmem [shape: f32[4,1], index: 12, kind: input, shape index: {}]   ;;  %s2100_s0 = inlined_call_operand.vmem [shape: f32[2,128], index: 0, kind: input, shape index: {}]   ;;  %s2101_s7 = inlined_call_operand.vmem [shape: f32[32,2], index: 7, kind: input, shape index: {}]   ;;  %s2102_s6 = inlined_call_operand.vmem [shape: f32[32,2], index: 6, kind: input, shape index: {}]   ;;  %s2103_s9 = inlined_call_operand.vmem [shape: f32[32,32], index: 9, kind: input, shape index: {}]   ;;  %s2104_s11 = inlined_call_operand.vmem [shape: f32[4,32], index: 11, kind: input, shape index: {}]   ;;  %s2105_s13 = inlined_call_operand.vmem [shape: f32[1,128], index: 13, kind: input, shape index: {}]   ;;  %s2106_s14 = inlined_call_operand.vmem [shape: f32[4,128], index: 14, kind: output, shape index: {}]  }
   0x1   :  { %1483 = vset.pattern.permute.xlu0 %v1485_v1  ;;  %v53_v2 = vld [vmem:[%s2092_s4] sm:$0x3]  ;;  %1484 = vset.pattern.permute.xlu1 %v1485_v1  ;;  %51 = vst [vmem:[#allocation2] sm:$0xf] %v1486_v5  ;;  %v661_v8 = vld [vmem:[%s2094_s8 + $0x8] sm:$0xff]  ;;  %v707_v18 = vld [vmem:[%s2097_s10 + $0x18] sm:$0xff] }
   0x2   :  { %56 = vperm.xlu0 %1483, %v53_v2   ;;  %v1567_v3 = vshrl.u32 %v67_v0, 7  ;;  %v60_v4 = vld [vmem:[%s2093_s5] sm:$0x3]  ;;  %358 = vmatprep.mubr.f32.mxu0 %v1486_v5  ;;  %v705_v22 = vld [vmem:[%s2097_s10 + $0x8] sm:$0xff]  ;;  %v952_v25 = vld [vmem:[%s2098_s3 + $0xf8] sm:$0xff] }
   0x3   :  { %429 = vmatprep.mubr.f32.mxu1 %v1486_v5  ;;  %v84_v10 = vld [vmem:[%s2095_s2] sm:$0x3]  ;;  %v951_v27 = vld [vmem:[%s2098_s3 + $0xf0] sm:$0xff]  ;;  %v950_v30 = vld [vmem:[%s2098_s3 + $0xe8] sm:$0xff] }
   0x4   :  { %v91_v6 = vsub.s32 1, %v1567_v3  ;;  %v87_v7 = vsub.s32 0, %v1567_v3  ;;  %v83_v9 = vadd.s32 120, %v1567_v3  ;;  %v189_v11 = vld [vmem:[%s2096_s1] sm:$0x3]  ;;  %v82_v12 = vadd.s32 112, %v1567_v3 }
   0x5   :  { %v81_v13 = vadd.s32 104, %v1567_v3  ;;  %v80_v20 = vadd.s32 96, %v1567_v3  ;;  %v79_v21 = vadd.s32 88, %v1567_v3  ;;  %v78_v23 = vadd.s32 80, %v1567_v3  ;;  %v949_v33 = vld [vmem:[%s2098_s3 + $0xe0] sm:$0xff]  ;;  %v948_v36 = vld [vmem:[%s2098_s3 + $0xd8] sm:$0xff] }
   0x6   :  { %63 = vperm.xlu0 %1483, %v60_v4   ;;  %v1589_v14 = vrot.slane %v84_v10, %v91_v6  ;;  %v1591_v15 = vrot.slane %v189_v11, %v91_v6  ;;  %v1593_v16 = vrot.slane %v84_v10, %v87_v7  ;;  %v1595_v17 = vrot.slane %v189_v11, %v87_v7  ;;  %v947_v38 = vld [vmem:[%s2098_s3 + $0xd0] sm:$0xff]  ;;  %v946_v39 = vld [vmem:[%s2098_s3 + $0xc8] sm:$0xff]  ;;  %v663_v40 = vld [vmem:[%s2094_s8 + $0x18] sm:$0xff] }
   0x7   :  { %v77_v24 = vadd.s32 72, %v1567_v3  ;;  %v76_v26 = vadd.s32 64, %v1567_v3  ;;  %v75_v28 = vadd.s32 56, %v1567_v3  ;;  %v74_v29 = vadd.s32 48, %v1567_v3  ;;  %v945_v41 = vld [vmem:[%s2098_s3 + $0xc0] sm:$0xff]  ;;  %681 = vperm.xlu1 %1484, %v663_v40   ;;  %v662_v42 = vld [vmem:[%s2094_s8 + $0x10] sm:$0xff] }
   0x8   :  { %vm124_vm0 = vcmp.eq.s32.totalorder %v83_v9, %v1589_v14  ;;  %vm229_vm1 = vcmp.eq.s32.totalorder %v83_v9, %v1591_v15  ;;  %vm123_vm2 = vcmp.eq.s32.totalorder %v83_v9, %v1593_v16  ;;  %vm228_vm3 = vcmp.eq.s32.totalorder %v83_v9, %v1595_v17  ;;  %v944_v43 = vld [vmem:[%s2098_s3 + $0xb8] sm:$0xff]  ;;  %v660_v44 = vld [vmem:[%s2094_s8] sm:$0xff]  ;;  %v943_v45 = vld [vmem:[%s2098_s3 + $0xb0] sm:$0xff] }
   0x9   :  { %1299 = vmatprep.subr.msk.mxu0 %vm124_vm0, %v1487_v19  ;;  %1331 = vmatprep.subr.msk.mxu1 %vm229_vm1, %v1487_v19  ;;  %vm122_vm4 = vcmp.eq.s32.totalorder %v82_v12, %v1589_v14  ;;  %vm227_vm5 = vcmp.eq.s32.totalorder %v82_v12, %v1591_v15  ;;  %vm121_vm6 = vcmp.eq.s32.totalorder %v82_v12, %v1593_v16  ;;  %v73_v31 = vadd.s32 40, %v1567_v3  ;;  %v706_v46 = vld [vmem:[%s2097_s10 + $0x10] sm:$0xff]  ;;  %v942_v47 = vld [vmem:[%s2098_s3 + $0xa8] sm:$0xff]  ;;  %v704_v48 = vld [vmem:[%s2097_s10] sm:$0xff] }
   0xa   :  { %671 = vperm.xlu0 %1483, %v661_v8   ;;  %1300 = vmatpush1.msk.msra.mxu0 %vm123_vm2, %v1487_v19  ;;  %vm226_vm7 = vcmp.eq.s32.totalorder %v82_v12, %v1595_v17  ;;  %vm120_vm8 = vcmp.eq.s32.totalorder %v81_v13, %v1589_v14  ;;  %vm225_vm9 = vcmp.eq.s32.totalorder %v81_v13, %v1591_v15  ;;  %v72_v32 = vadd.s32 32, %v1567_v3  ;;  %v941_v49 = vld [vmem:[%s2098_s3 + $0xa0] sm:$0xff]  ;;  %v936_v50 = vld [vmem:[%s2098_s3 + $0x78] sm:$0xff]  ;;  %v935_v52 = vld [vmem:[%s2098_s3 + $0x70] sm:$0xff] }
   0xb   :  { %1332 = vmatpush1.msk.msra.mxu1 %vm228_vm3, %v1487_v19  ;;  %1301 = vmatprep.subr.msk.mxu0 %vm122_vm4, %v1487_v19  ;;  %vm119_vm10 = vcmp.eq.s32.totalorder %v81_v13, %v1593_v16  ;;  %vm224_vm11 = vcmp.eq.s32.totalorder %v81_v13, %v1595_v17  ;;  %vm118_vm12 = vcmp.eq.s32.totalorder %v80_v20, %v1589_v14  ;;  %v71_v34 = vadd.s32 24, %v1567_v3  ;;  %v940_v51 = vld [vmem:[%s2098_s3 + $0x98] sm:$0xff]  ;;  %v939_v53 = vld [vmem:[%s2098_s3 + $0x90] sm:$0xff]  ;;  %v934_v54 = vld [vmem:[%s2098_s3 + $0x68] sm:$0xff] }
   0xc   :  { %1333 = vmatprep.subr.msk.mxu1 %vm227_vm5, %v1487_v19  ;;  %1302 = vmatpush1.msk.msra.mxu0 %vm121_vm6, %v1487_v19  ;;  %vm223_vm13 = vcmp.eq.s32.totalorder %v80_v20, %v1591_v15  ;;  %vm117_vm14 = vcmp.eq.s32.totalorder %v80_v20, %v1593_v16  ;;  %vm222_vm15 = vcmp.eq.s32.totalorder %v80_v20, %v1595_v17  ;;  %v70_v35 = vadd.s32 16, %v1567_v3  ;;  %v938_v55 = vld [vmem:[%s2098_s3 + $0x88] sm:$0xff]  ;;  %v933_v56 = vld [vmem:[%s2098_s3 + $0x60] sm:$0xff]  ;;  %v932_v58 = vld [vmem:[%s2098_s3 + $0x58] sm:$0xff] }
   0xd   :  { %1334 = vmatpush1.msk.msra.mxu1 %vm226_vm7, %v1487_v19  ;;  %1303 = vmatprep.subr.msk.mxu0 %vm120_vm8, %v1487_v19  ;;  %vm116_vm0 = vcmp.eq.s32.totalorder %v79_v21, %v1589_v14  ;;  %vm221_vm1 = vcmp.eq.s32.totalorder %v79_v21, %v1591_v15  ;;  %vm115_vm2 = vcmp.eq.s32.totalorder %v79_v21, %v1593_v16  ;;  %v69_v37 = vadd.s32 8, %v1567_v3  ;;  %v839_v57 = vld [vmem:[%s2099_s12] sm:$0xf]  ;;  %v931_v60 = vld [vmem:[%s2098_s3 + $0x50] sm:$0xff]  ;;  %v930_v61 = vld [vmem:[%s2098_s3 + $0x48] sm:$0xff] }
   0xe   :  { %725 = vperm.xlu0 %1483, %v707_v18   ;;  %1335 = vmatprep.subr.msk.mxu1 %vm225_vm9, %v1487_v19  ;;  %vm220_vm3 = vcmp.eq.s32.totalorder %v79_v21, %v1595_v17  ;;  %vm114_vm4 = vcmp.eq.s32.totalorder %v78_v23, %v1589_v14  ;;  %vm219_vm5 = vcmp.eq.s32.totalorder %v78_v23, %v1591_v15  ;;  %v921_v59 = vld [vmem:[%s2098_s3] sm:$0xff]  ;;  %v928_v63 = vld [vmem:[%s2098_s3 + $0x38] sm:$0xff]  ;;  %v927_v1 = vld [vmem:[%s2098_s3 + $0x30] sm:$0xff] }
   0xf   :  { %1304 = vmatpush1.msk.msra.mxu0 %vm119_vm10, %v1487_v19  ;;  %1336 = vmatpush1.msk.msra.mxu1 %vm224_vm11, %v1487_v19  ;;  %vm113_vm6 = vcmp.eq.s32.totalorder %v78_v23, %v1593_v16  ;;  %vm218_vm7 = vcmp.eq.s32.totalorder %v78_v23, %v1595_v17  ;;  %vm112_vm8 = vcmp.eq.s32.totalorder %v77_v24, %v1589_v14  ;;  %v929_v62 = vld [vmem:[%s2098_s3 + $0x40] sm:$0xff]  ;;  %v926_v2 = vld [vmem:[%s2098_s3 + $0x28] sm:$0xff]  ;;  %v924_v4 = vld [vmem:[%s2098_s3 + $0x18] sm:$0xff] }
  0x10   :  { %1305 = vmatprep.subr.msk.mxu0 %vm118_vm12, %v1487_v19  ;;  %1337 = vmatprep.subr.msk.mxu1 %vm223_vm13, %v1487_v19  ;;  %vm217_vm9 = vcmp.eq.s32.totalorder %v77_v24, %v1591_v15  ;;  %vm111_vm10 = vcmp.eq.s32.totalorder %v77_v24, %v1593_v16  ;;  %vm216_vm11 = vcmp.eq.s32.totalorder %v77_v24, %v1595_v17  ;;  %v923_v6 = vld [vmem:[%s2098_s3 + $0x10] sm:$0xff]  ;;  %v922_v7 = vld [vmem:[%s2098_s3 + $0x8] sm:$0xff]  ;;  %v52_v9 = vld [vmem:[%s2100_s0] sm:$0x3] }
  0x11   :  { %1306 = vmatpush1.msk.msra.mxu0 %vm117_vm14, %v1487_v19  ;;  %1338 = vmatpush1.msk.msra.mxu1 %vm222_vm15, %v1487_v19  ;;  %vm110_vm12 = vcmp.eq.s32.totalorder %v76_v26, %v1589_v14  ;;  %vm215_vm13 = vcmp.eq.s32.totalorder %v76_v26, %v1591_v15  ;;  %vm109_vm14 = vcmp.eq.s32.totalorder %v76_v26, %v1593_v16  ;;  %v937_v10 = vld [vmem:[%s2098_s3 + $0x80] sm:$0xff] }
  0x12   :  { %715 = vperm.xlu0 %1483, %v705_v22   ;;  %1307 = vmatprep.subr.msk.mxu0 %vm116_vm0, %v1487_v19  ;;  %vm214_vm15 = vcmp.eq.s32.totalorder %v76_v26, %v1595_v17  ;;  %vm108_vm0 = vcmp.eq.s32.totalorder %v75_v28, %v1589_v14 }
  0x13   :  { %1339 = vmatprep.subr.msk.mxu1 %vm221_vm1, %v1487_v19  ;;  %1308 = vmatpush1.msk.msra.mxu0 %vm115_vm2, %v1487_v19  ;;  %vm213_vm1 = vcmp.eq.s32.totalorder %v75_v28, %v1591_v15  ;;  %vm107_vm2 = vcmp.eq.s32.totalorder %v75_v28, %v1593_v16 }
  0x14   :  { %1340 = vmatpush1.msk.msra.mxu1 %vm220_vm3, %v1487_v19  ;;  %1309 = vmatprep.subr.msk.mxu0 %vm114_vm4, %v1487_v19  ;;  %vm212_vm3 = vcmp.eq.s32.totalorder %v75_v28, %v1595_v17  ;;  %vm106_vm4 = vcmp.eq.s32.totalorder %v74_v29, %v1589_v14 }
  0x15   :  { %1341 = vmatprep.subr.msk.mxu1 %vm219_vm5, %v1487_v19  ;;  %1310 = vmatpush1.msk.msra.mxu0 %vm113_vm6, %v1487_v19  ;;  %vm211_vm5 = vcmp.eq.s32.totalorder %v74_v29, %v1591_v15  ;;  %vm105_vm6 = vcmp.eq.s32.totalorder %v74_v29, %v1593_v16 }
  0x16   :  { %1047 = vperm.xlu0 %1483, %v952_v25   ;;  %1342 = vmatpush1.msk.msra.mxu1 %vm218_vm7, %v1487_v19  ;;  %vm210_vm7 = vcmp.eq.s32.totalorder %v74_v29, %v1595_v17 }
  0x17   :  { %1311 = vmatprep.subr.msk.mxu0 %vm112_vm8, %v1487_v19  ;;  %1343 = vmatprep.subr.msk.mxu1 %vm217_vm9, %v1487_v19  ;;  %vm104_vm8 = vcmp.eq.s32.totalorder %v73_v31, %v1589_v14  ;;  %vm209_vm9 = vcmp.eq.s32.totalorder %v73_v31, %v1591_v15 }
  0x18   :  { %1312 = vmatpush1.msk.msra.mxu0 %vm111_vm10, %v1487_v19  ;;  %1344 = vmatpush1.msk.msra.mxu1 %vm216_vm11, %v1487_v19  ;;  %vm103_vm10 = vcmp.eq.s32.totalorder %v73_v31, %v1593_v16  ;;  %vm208_vm11 = vcmp.eq.s32.totalorder %v73_v31, %v1595_v17 }
  0x19   :  { %1313 = vmatprep.subr.msk.mxu0 %vm110_vm12, %v1487_v19  ;;  %1345 = vmatprep.subr.msk.mxu1 %vm215_vm13, %v1487_v19  ;;  %vm102_vm12 = vcmp.eq.s32.totalorder %v72_v32, %v1589_v14  ;;  %vm207_vm13 = vcmp.eq.s32.totalorder %v72_v32, %v1591_v15 }
  0x1a   :  { %1044 = vperm.xlu0 %1483, %v951_v27   ;;  %1314 = vmatpush1.msk.msra.mxu0 %vm109_vm14, %v1487_v19  ;;  %vm101_vm14 = vcmp.eq.s32.totalorder %v72_v32, %v1593_v16 }
  0x1b   :  { %1346 = vmatpush1.msk.msra.mxu1 %vm214_vm15, %v1487_v19  ;;  %1315 = vmatprep.subr.msk.mxu0 %vm108_vm0, %v1487_v19  ;;  %vm206_vm15 = vcmp.eq.s32.totalorder %v72_v32, %v1595_v17  ;;  %vm100_vm0 = vcmp.eq.s32.totalorder %v71_v34, %v1589_v14 }
  0x1c   :  { %1347 = vmatprep.subr.msk.mxu1 %vm213_vm1, %v1487_v19  ;;  %1316 = vmatpush1.msk.msra.mxu0 %vm107_vm2, %v1487_v19  ;;  %vm205_vm1 = vcmp.eq.s32.totalorder %v71_v34, %v1591_v15  ;;  %vm99_vm2 = vcmp.eq.s32.totalorder %v71_v34, %v1593_v16 }
  0x1d   :  { %1348 = vmatpush1.msk.msra.mxu1 %vm212_vm3, %v1487_v19  ;;  %1317 = vmatprep.subr.msk.mxu0 %vm106_vm4, %v1487_v19  ;;  %vm204_vm3 = vcmp.eq.s32.totalorder %v71_v34, %v1595_v17  ;;  %vm98_vm4 = vcmp.eq.s32.totalorder %v70_v35, %v1589_v14 }
  0x1e   :  { %1041 = vperm.xlu0 %1483, %v950_v30   ;;  %1349 = vmatprep.subr.msk.mxu1 %vm211_vm5, %v1487_v19  ;;  %vm203_vm5 = vcmp.eq.s32.totalorder %v70_v35, %v1591_v15 }
  0x1f   :  { %1318 = vmatpush1.msk.msra.mxu0 %vm105_vm6, %v1487_v19  ;;  %1350 = vmatpush1.msk.msra.mxu1 %vm210_vm7, %v1487_v19  ;;  %vm97_vm6 = vcmp.eq.s32.totalorder %v70_v35, %v1593_v16  ;;  %vm202_vm7 = vcmp.eq.s32.totalorder %v70_v35, %v1595_v17 }
  0x20   :  { %1319 = vmatprep.subr.msk.mxu0 %vm104_vm8, %v1487_v19  ;;  %1351 = vmatprep.subr.msk.mxu1 %vm209_vm9, %v1487_v19  ;;  %vm96_vm8 = vcmp.eq.s32.totalorder %v69_v37, %v1589_v14  ;;  %vm201_vm9 = vcmp.eq.s32.totalorder %v69_v37, %v1591_v15 }
  0x21   :  { %1320 = vmatpush1.msk.msra.mxu0 %vm103_vm10, %v1487_v19  ;;  %1352 = vmatpush1.msk.msra.mxu1 %vm208_vm11, %v1487_v19  ;;  %vm95_vm10 = vcmp.eq.s32.totalorder %v69_v37, %v1593_v16  ;;  %vm200_vm11 = vcmp.eq.s32.totalorder %v69_v37, %v1595_v17 }
  0x22   :  { %1038 = vperm.xlu0 %1483, %v949_v33   ;;  %1321 = vmatprep.subr.msk.mxu0 %vm102_vm12, %v1487_v19  ;;  %vm94_vm12 = vcmp.eq.s32.totalorder %v1567_v3, %v1589_v14 }
  0x23   :  { %1353 = vmatprep.subr.msk.mxu1 %vm207_vm13, %v1487_v19  ;;  %1322 = vmatpush1.msk.msra.mxu0 %vm101_vm14, %v1487_v19  ;;  %vm199_vm13 = vcmp.eq.s32.totalorder %v1567_v3, %v1591_v15  ;;  %vm93_vm14 = vcmp.eq.s32.totalorder %v1567_v3, %v1593_v16 }
  0x24   :  { %1354 = vmatpush1.msk.msra.mxu1 %vm206_vm15, %v1487_v19  ;;  %1323 = vmatprep.subr.msk.mxu0 %vm100_vm0, %v1487_v19  ;;  %vm198_vm15 = vcmp.eq.s32.totalorder %v1567_v3, %v1595_v17  ;;  %v925_v3 = vld [vmem:[%s2098_s3 + $0x20] sm:$0xff]  ;;  %vm457_vm0 = vcmask 1041408  }
  0x25   :  { %1355 = vmatprep.subr.msk.mxu1 %vm205_vm1, %v1487_v19  ;;  %1324 = vmatpush1.msk.msra.mxu0 %vm99_vm2, %v1487_v19  ;;  %vm444_vm1 = vcmask 15360  }
  0x26   :  { %1035 = vperm.xlu0 %1483, %v948_v36   ;;  %1356 = vmatpush1.msk.msra.mxu1 %vm204_vm3, %v1487_v19 }
  0x27   :  { %1325 = vmatprep.subr.msk.mxu0 %vm98_vm4, %v1487_v19  ;;  %1357 = vmatprep.subr.msk.mxu1 %vm203_vm5, %v1487_v19 }
  0x28   :  { %1326 = vmatpush1.msk.msra.mxu0 %vm97_vm6, %v1487_v19  ;;  %1358 = vmatpush1.msk.msra.mxu1 %vm202_vm7, %v1487_v19 }
  0x29   :  { %1327 = vmatprep.subr.msk.mxu0 %vm96_vm8, %v1487_v19  ;;  %1359 = vmatprep.subr.msk.mxu1 %vm201_vm9, %v1487_v19 }
  0x2a   :  { %1032 = vperm.xlu0 %1483, %v947_v38   ;;  %1328 = vmatpush1.msk.msra.mxu0 %vm95_vm10, %v1487_v19 }
  0x2b   :  { %1360 = vmatpush1.msk.msra.mxu1 %vm200_vm11, %v1487_v19  ;;  %1329 = vmatprep.subr.msk.mxu0 %vm94_vm12, %v1487_v19 }
  0x2c   :  { %1361 = vmatprep.subr.msk.mxu1 %vm199_vm13, %v1487_v19  ;;  %1330 = vmatpush1.msk.msra.mxu0 %vm93_vm14, %v1487_v19 }
  0x2d   :  { %1362 = vmatpush1.msk.msra.mxu1 %vm198_vm15, %v1487_v19  ;;  %676 = vperm.xlu1 %1484, %v662_v42  }
  0x2e   :  { %1029 = vperm.xlu0 %1483, %v946_v39  }
  0x31   :  { %666 = vperm.xlu1 %1484, %v660_v44  }
  0x32   :  { %1026 = vperm.xlu0 %1483, %v945_v41  }
  0x35   :  { %720 = vperm.xlu1 %1484, %v706_v46  }
  0x36   :  { %1023 = vperm.xlu0 %1483, %v944_v43  }
  0x39   :  { %710 = vperm.xlu1 %1484, %v704_v48  }
  0x3a   :  { %1020 = vperm.xlu0 %1483, %v943_v45  }
  0x3d   :  { %999 = vperm.xlu1 %1484, %v936_v50   ;;  %v440_v50 = vld [vmem:[%s2101_s7] sm:$0xff] }
  0x3e   :  { %1017 = vperm.xlu0 %1483, %v942_v47   ;;  %v1913_v47 = vand.u32 127, %v67_v0  ;;  %v437_v0 = vld [vmem:[%s2102_s6 + $0x8] sm:$0xff] }
  0x41   :  { %996 = vperm.xlu1 %1484, %v935_v52  }
  0x42   :  { %1014 = vperm.xlu0 %1483, %v941_v49  }
  0x45   :  { %993 = vperm.xlu1 %1484, %v934_v54   ;;  %v441_v54 = vld [vmem:[%s2101_s7 + $0x8] sm:$0xff] }
  0x46   :  { %1011 = vperm.xlu0 %1483, %v940_v51   ;;  %v436_v51 = vld [vmem:[%s2102_s6] sm:$0xff] }
  0x49   :  { %990 = vperm.xlu1 %1484, %v933_v56   ;;  %v438_v56 = vld [vmem:[%s2102_s6 + $0x10] sm:$0xff] }
  0x4a   :  { %1008 = vperm.xlu0 %1483, %v939_v53  }
  0x4d   :  { %987 = vperm.xlu1 %1484, %v932_v58  }
  0x4e   :  { %1005 = vperm.xlu0 %1483, %v938_v55  }
  0x51   :  { %984 = vperm.xlu1 %1484, %v931_v60  }
  0x52   :  { %842 = vperm.xlu0 %1483, %v839_v57   ;;  %v442_v57 = vld [vmem:[%s2101_s7 + $0x10] sm:$0xff] }
  0x55   :  { %981 = vperm.xlu1 %1484, %v930_v61   ;;  %v443_v61 = vld [vmem:[%s2101_s7 + $0x18] sm:$0xff] }
  0x56   :  { %954 = vperm.xlu0 %1483, %v921_v59   ;;  %v439_v59 = vld [vmem:[%s2102_s6 + $0x18] sm:$0xff] }
  0x59   :  { %978 = vperm.xlu1 %1484, %v929_v62  }
  0x5d   :  { %975 = vperm.xlu1 %1484, %v928_v63  }
  0x61   :  { %972 = vperm.xlu1 %1484, %v927_v1  }
  0x65   :  { %969 = vperm.xlu1 %1484, %v926_v2  }
  0x69   :  { %966 = vperm.xlu1 %1484, %v925_v3  }
  0x6d   :  { %963 = vperm.xlu1 %1484, %v924_v4  }
  0x71   :  { %960 = vperm.xlu1 %1484, %v923_v6  }
  0x75   :  { %957 = vperm.xlu1 %1484, %v922_v7  }
  0x79   :  { %1002 = vperm.xlu1 %1484, %v937_v10  }
  0x7d   :  { %v57_v8 = vpop.permute.xlu0 %56 }
  0x7e   :  { %v59_v11 = vmul.f32 %v57_v8, %v52_v9 }
  0x81   :  { %v64_v12 = vpop.permute.xlu0 %63 }
  0x82   :  { %v66_v13 = vadd.f32 %v64_v12, %v59_v11  ;;  %v1866_v14 = vpop.permute.xlu1 %681 }
  0x84   :  { %359 = vmatmul.mubr.f32.vlgmr.msra.gmra.mxu0 %v66_v13  ;;  %430 = vmatmul.mubr.f32.vlgmr.msra.gmra.mxu1 %v66_v13 }
  0x85   :  { %528 = vmatprep.mubr.f32.mxu0 %v1486_v5  ;;  %635 = vmatprep.mubr.f32.mxu1 %v1486_v5  ;;  %v1870_v16 = vpop.permute.xlu0 %671 }
  0x89   :  { %v1874_v18 = vpop.permute.xlu0 %725 }
  0x8d   :  { %v1878_v21 = vpop.permute.xlu0 %715 }
  0x91   :  { %v1048_v23 = vpop.permute.xlu0 %1047 }
  0x92   :  { %vm1080_vm3 = vcmp.eq.s32.totalorder %v1913_v47, %v1048_v23 }
  0x95   :  { %v1045_v25 = vpop.permute.xlu0 %1044 }
  0x96   :  { %vm1079_vm5 = vcmp.eq.s32.totalorder %v1913_v47, %v1045_v25 }
  0x99   :  { %v1042_v27 = vpop.permute.xlu0 %1041 }
  0x9a   :  { %vm1078_vm7 = vcmp.eq.s32.totalorder %v1913_v47, %v1042_v27 }
  0x9d   :  { %v1039_v29 = vpop.permute.xlu0 %1038 }
  0x9e   :  { %vm1077_vm9 = vcmp.eq.s32.totalorder %v1913_v47, %v1039_v29 }
  0xa1   :  { %v1884_v31 = vpop.permute.xlu0 %1035 }
  0xa2   :  { %vm1076_vm11 = vcmp.eq.s32.totalorder %v1913_v47, %v1884_v31 }
  0xa5   :  { %v1888_v33 = vpop.permute.xlu0 %1032 }
  0xa6   :  { %vm1075_vm13 = vcmp.eq.s32.totalorder %v1913_v47, %v1888_v33 }
  0xa8   :  { %v1868_v15 = vpop.permute.xlu1 %676 }
  0xa9   :  { %v1892_v35 = vpop.permute.xlu0 %1029 }
  0xaa   :  { %vm1074_vm15 = vcmp.eq.s32.totalorder %v1913_v47, %v1892_v35 }
  0xac   :  { %v1872_v17 = vpop.permute.xlu1 %666 }
  0xad   :  { %v1896_v37 = vpop.permute.xlu0 %1026 }
  0xb0   :  { %v1876_v20 = vpop.permute.xlu1 %720 }
  0xb1   :  { %v1900_v39 = vpop.permute.xlu0 %1023 }
  0xb4   :  { %v1880_v22 = vpop.permute.xlu1 %710 }
  0xb5   :  { %v1904_v41 = vpop.permute.xlu0 %1020 }
  0xb8   :  { %v1000_v24 = vpop.permute.xlu1 %999 }
  0xb9   :  { %v1908_v43 = vpop.permute.xlu0 %1017  ;;  %vm1064_vm2 = vcmp.eq.s32.totalorder %v1913_v47, %v1000_v24 }
  0xbc   :  { %v997_v26 = vpop.permute.xlu1 %996 }
  0xbd   :  { %v1921_v52 = vpop.permute.xlu0 %1014  ;;  %vm1063_vm4 = vcmp.eq.s32.totalorder %v1913_v47, %v997_v26 }
  0xc0   :  { %v994_v28 = vpop.permute.xlu1 %993 }
  0xc1   :  { %vm1062_vm6 = vcmp.eq.s32.totalorder %v1913_v47, %v994_v28  ;;  %v1944_v55 = vpop.permute.xlu0 %1011 }
  0xc4   :  { %v1882_v30 = vpop.permute.xlu1 %990 }
  0xc5   :  { %vm1061_vm8 = vcmp.eq.s32.totalorder %v1913_v47, %v1882_v30  ;;  %v1009_v60 = vpop.permute.xlu0 %1008 }
  0xc8   :  { %v1886_v32 = vpop.permute.xlu1 %987 }
  0xc9   :  { %vm1060_vm10 = vcmp.eq.s32.totalorder %v1913_v47, %v1886_v32  ;;  %v1006_v63 = vpop.permute.xlu0 %1005 }
  0xcc   :  { %v1890_v34 = vpop.permute.xlu1 %984 }
  0xcd   :  { %vm1059_vm12 = vcmp.eq.s32.totalorder %v1913_v47, %v1890_v34  ;;  %v2022_v2 = vpop.permute.xlu0 %842 }
  0xd0   :  { %v1894_v36 = vpop.permute.xlu1 %981 }
  0xd1   :  { %vm1058_vm14 = vcmp.eq.s32.totalorder %v1913_v47, %v1894_v36  ;;  %v955_v4 = vpop.permute.xlu0 %954 }
  0xd4   :  { %v1898_v38 = vpop.permute.xlu1 %978 }
  0xd8   :  { %v1902_v40 = vpop.permute.xlu1 %975 }
  0xdc   :  { %v1906_v42 = vpop.permute.xlu1 %972 }
  0xe0   :  { %v1910_v44 = vpop.permute.xlu1 %969 }
  0xe4   :  { %v1933_v53 = vpop.permute.xlu1 %966 }
  0xe8   :  { %v964_v58 = vpop.permute.xlu1 %963 }
  0xec   :  { %v961_v62 = vpop.permute.xlu1 %960 }
  0xf0   :  { %v958_v1 = vpop.permute.xlu1 %957 }
  0xf4   :  { %v1003_v3 = vpop.permute.xlu1 %1002 }
 0x144   :  { %v360_v45 = vpop.f32.mrf.mxu0  ;;  %v431_v46 = vpop.f32.mrf.mxu1 }
 0x146   :  { %v362_v48 = vpop.f32.mrf.mxu0  ;;  %v433_v49 = vpop.f32.mrf.mxu1 }
 0x147   :  { %1363 = vmatprep.subr.msk.mxu0 %vm457_vm0, %v433_v49  ;;  %1369 = vmatprep.subr.msk.mxu1 %vm457_vm0, %v362_v48 }
 0x148   :  { %1364 = vmatpush1.msk.msra.mxu0 %vm457_vm0, %v431_v46  ;;  %1370 = vmatpush1.msk.msra.mxu1 %vm457_vm0, %v360_v45  ;;  %vm1057_vm0 = vcmp.eq.s32.totalorder %v1913_v47, %v1898_v38 }
 0x149   :  { %1365 = vmatmul.mubr.msk.f32.vlgmr.msra.gmra.mxu0 %vm444_vm1, %v440_v50  ;;  %1371 = vmatmul.mubr.msk.f32.vlgmr.msra.gmra.mxu1 %vm444_vm1, %v436_v51 }
 0x14a   :  { %1445 = vmatprep.subr.msk.mxu0 %vm1080_vm3, %v1487_v19  ;;  %534 = vmatprep.mubr.f32.mxu0 %v1486_v5  ;;  %vm1056_vm3 = vcmp.eq.s32.totalorder %v1913_v47, %v1902_v40 }
 0x14b   :  { %1446 = vmatpush3.msk.msra.mxu0 %vm1064_vm2, %v1487_v19  ;;  %641 = vmatprep.mubr.f32.mxu1 %v1486_v5  ;;  %vm1073_vm2 = vcmp.eq.s32.totalorder %v1913_v47, %v1896_v37 }
 0x14c   :  { %1447 = vmatprep.subr.msk.mxu0 %vm1079_vm5, %v1487_v19  ;;  %vm1071_vm5 = vcmp.eq.s32.totalorder %v1913_v47, %v1904_v41 }
 0x14d   :  { %1448 = vmatpush3.msk.msra.mxu0 %vm1063_vm4, %v1487_v19  ;;  %1372 = vmatmul.mubr.msk.f32.gmra.mxu1 %vm444_vm1, %v437_v0  ;;  %vm1072_vm4 = vcmp.eq.s32.totalorder %v1913_v47, %v1900_v39  ;;  %v703_v0 = vld [vmem:[%s2103_s9 + $0x18] sm:$0xff] }
 0x14e   :  { %1366 = vmatmul.mubr.msk.f32.gmra.mxu0 %vm444_vm1, %v441_v54  ;;  %1449 = vmatprep.subr.msk.mxu0 %vm1078_vm7, %v1487_v19  ;;  %vm1070_vm7 = vcmp.eq.s32.totalorder %v1913_v47, %v1908_v43 }
 0x14f   :  { %1450 = vmatpush3.msk.msra.mxu0 %vm1062_vm6, %v1487_v19  ;;  %540 = vmatprep.mubr.f32.mxu0 %v1486_v5  ;;  %vm1054_vm6 = vcmp.eq.s32.totalorder %v1913_v47, %v1910_v44 }
 0x150   :  { %1451 = vmatprep.subr.msk.mxu0 %vm1077_vm9, %v1487_v19  ;;  %647 = vmatprep.mubr.f32.mxu1 %v1486_v5  ;;  %vm1069_vm9 = vcmp.eq.s32.totalorder %v1913_v47, %v1921_v52  ;;  %v702_v52 = vld [vmem:[%s2103_s9 + $0x10] sm:$0xff] }
 0x151   :  { %1452 = vmatpush3.msk.msra.mxu0 %vm1061_vm8, %v1487_v19  ;;  %1373 = vmatmul.mubr.msk.f32.gmra.mxu1 %vm444_vm1, %v438_v56  ;;  %vm1053_vm8 = vcmp.eq.s32.totalorder %v1913_v47, %v1933_v53 }
 0x152   :  { %1367 = vmatmul.mubr.msk.f32.gmra.mxu0 %vm444_vm1, %v442_v57  ;;  %1453 = vmatprep.subr.msk.mxu0 %vm1076_vm11, %v1487_v19  ;;  %vm1068_vm11 = vcmp.eq.s32.totalorder %v1913_v47, %v1944_v55 }
 0x153   :  { %1454 = vmatpush3.msk.msra.mxu0 %vm1060_vm10, %v1487_v19  ;;  %546 = vmatprep.mubr.f32.mxu0 %v1486_v5  ;;  %vm1052_vm10 = vcmp.eq.s32.totalorder %v1913_v47, %v964_v58 }
 0x154   :  { %1455 = vmatprep.subr.msk.mxu0 %vm1075_vm13, %v1487_v19  ;;  %653 = vmatprep.mubr.f32.mxu1 %v1486_v5  ;;  %vm1067_vm13 = vcmp.eq.s32.totalorder %v1913_v47, %v1009_v60 }
 0x155   :  { %1456 = vmatpush3.msk.msra.mxu0 %vm1059_vm12, %v1487_v19  ;;  %1374 = vmatmul.mubr.msk.f32.gmra.mxu1 %vm444_vm1, %v439_v59  ;;  %vm1051_vm12 = vcmp.eq.s32.totalorder %v1913_v47, %v961_v62 }
 0x156   :  { %1368 = vmatmul.mubr.msk.f32.gmra.mxu0 %vm444_vm1, %v443_v61  ;;  %1457 = vmatprep.subr.msk.mxu0 %vm1074_vm15, %v1487_v19  ;;  %vm1055_vm1 = vcmp.eq.s32.totalorder %v1913_v47, %v1906_v42  ;;  %vm1066_vm15 = vcmp.eq.s32.totalorder %v1913_v47, %v1006_v63 }
 0x157   :  { %1458 = vmatpush3.msk.msra.mxu0 %vm1058_vm14, %v1487_v19  ;;  %805 = vmatprep.mubr.f32.mxu1 %v1486_v5  ;;  %vm1050_vm14 = vcmp.eq.s32.totalorder %v1913_v47, %v958_v1 }
 0x158   :  { %1459 = vmatprep.subr.msk.mxu0 %vm1073_vm2, %v1487_v19  ;;  %vm1049_vm2 = vcmp.eq.s32.totalorder %v1913_v47, %v955_v4 }
 0x159   :  { %1460 = vmatpush3.msk.msra.mxu0 %vm1057_vm0, %v1487_v19  ;;  %vm1065_vm0 = vcmp.eq.s32.totalorder %v1913_v47, %v1003_v3 }
 0x15a   :  { %1461 = vmatprep.subr.msk.mxu0 %vm1072_vm4, %v1487_v19 }
 0x15b   :  { %1462 = vmatpush3.msk.msra.mxu0 %vm1056_vm3, %v1487_v19  ;;  %vm728_vm3 = vcmask 261120  }
 0x15c   :  { %1463 = vmatprep.subr.msk.mxu0 %vm1071_vm5, %v1487_v19 }
 0x15d   :  { %1464 = vmatpush3.msk.msra.mxu0 %vm1055_vm1, %v1487_v19 }
 0x15e   :  { %1465 = vmatprep.subr.msk.mxu0 %vm1070_vm7, %v1487_v19 }
 0x15f   :  { %1466 = vmatpush3.msk.msra.mxu0 %vm1054_vm6, %v1487_v19 }
 0x160   :  { %1467 = vmatprep.subr.msk.mxu0 %vm1069_vm9, %v1487_v19 }
 0x161   :  { %1468 = vmatpush3.msk.msra.mxu0 %vm1053_vm8, %v1487_v19 }
 0x162   :  { %1469 = vmatprep.subr.msk.mxu0 %vm1068_vm11, %v1487_v19 }
 0x163   :  { %1470 = vmatpush3.msk.msra.mxu0 %vm1052_vm10, %v1487_v19 }
 0x164   :  { %1471 = vmatprep.subr.msk.mxu0 %vm1067_vm13, %v1487_v19 }
 0x165   :  { %1472 = vmatpush3.msk.msra.mxu0 %vm1051_vm12, %v1487_v19 }
 0x166   :  { %1473 = vmatprep.subr.msk.mxu0 %vm1066_vm15, %v1487_v19 }
 0x167   :  { %1474 = vmatpush3.msk.msra.mxu0 %vm1050_vm14, %v1487_v19 }
 0x168   :  { %1475 = vmatprep.subr.msk.mxu0 %vm1065_vm0, %v1487_v19 }
 0x169   :  { %1476 = vmatpush3.msk.msra.mxu0 %vm1049_vm2, %v1487_v19 }
 0x209   :  { %v530_v6 = vpop.f32.mrf.mxu0  ;;  %v637_v7 = vpop.f32.mrf.mxu1 }
 0x20a   :  { %v638_v40 = vadd.f32 %v637_v7, %v530_v6 }
 0x20b   :  { %v532_v8 = vpop.f32.mrf.mxu0  ;;  %v639_v9 = vpop.f32.mrf.mxu1 }
 0x20c   :  { %v640_v37 = vadd.f32 %v639_v9, %v532_v8  ;;  %v684_v48 = vadd.f32 %v1872_v17, %v638_v40 }
 0x20d   :  { %v643_v10 = vpop.f32.mrf.mxu1 }
 0x20e   :  { %v536_v11 = vpop.f32.mrf.mxu0  ;;  %v685_v46 = vadd.f32 %v1872_v17, %v640_v37  ;;  %v701_v17 = vld [vmem:[%s2103_s9 + $0x8] sm:$0xff] }
 0x20f   :  { %v645_v12 = vpop.f32.mrf.mxu1  ;;  %v644_v35 = vadd.f32 %v643_v10, %v536_v11 }
 0x210   :  { %v538_v13 = vpop.f32.mrf.mxu0  ;;  %v693_v51 = vmax.f32 %v685_v46, 0.0 }
 0x211   :  { %v649_v23 = vpop.f32.mrf.mxu1  ;;  %v646_v19 = vadd.f32 %v645_v12, %v538_v13  ;;  %v686_v44 = vadd.f32 %v1870_v16, %v644_v35 }
 0x212   :  { %v542_v24 = vpop.f32.mrf.mxu0 }
 0x213   :  { %v651_v25 = vpop.f32.mrf.mxu1  ;;  %v650_v32 = vadd.f32 %v649_v23, %v542_v24  ;;  %v687_v42 = vadd.f32 %v1870_v16, %v646_v19  ;;  %v700_v16 = vld [vmem:[%s2103_s9] sm:$0xff] }
 0x214   :  { %v544_v26 = vpop.f32.mrf.mxu0 }
 0x215   :  { %v655_v27 = vpop.f32.mrf.mxu1  ;;  %v652_v29 = vadd.f32 %v651_v25, %v544_v26  ;;  %v688_v41 = vadd.f32 %v1868_v15, %v650_v32  ;;  %v695_v50 = vmax.f32 %v687_v42, 0.0  ;;  %v1145_v26 = vld [vmem:[#allocation2] sm:$0xf] }
 0x216   :  { %v548_v28 = vpop.f32.mrf.mxu0 }
 0x217   :  { %v656_v30 = vadd.f32 %v655_v27, %v548_v28  ;;  %v657_v31 = vpop.f32.mrf.mxu1  ;;  %v689_v38 = vadd.f32 %v1868_v15, %v652_v29  ;;  %v696_v49 = vmax.f32 %v688_v41, 0.0  ;;  %v692_v15 = vmax.f32 %v684_v48, 0.0 }
 0x218   :  { %v550_v33 = vpop.f32.mrf.mxu0 }
 0x219   :  { %v658_v34 = vadd.f32 %v657_v31, %v550_v33  ;;  %v690_v36 = vadd.f32 %v1866_v14, %v656_v30  ;;  %v697_v47 = vmax.f32 %v689_v38, 0.0  ;;  %v1444_v30 = vld [vmem:[%s2105_s13] ss:$0 sm:$0xff] }
 0x21b   :  { %v691_v39 = vadd.f32 %v1866_v14, %v658_v34  ;;  %v698_v45 = vmax.f32 %v690_v36, 0.0  ;;  %v694_v14 = vmax.f32 %v686_v44, 0.0 }
 0x21d   :  { %v699_v43 = vmax.f32 %v691_v39, 0.0 }
 0x21f   :  { %765 = vmatprep.subr.mxu1 %v699_v43 }
 0x220   :  { %766 = vmatpush1.msra.mxu1 %v698_v45 }
 0x221   :  { %767 = vmatprep.subr.mxu1 %v697_v47 }
 0x222   :  { %768 = vmatpush1.msra.mxu1 %v696_v49 }
 0x223   :  { %769 = vmatprep.subr.mxu1 %v695_v50 }
 0x224   :  { %770 = vmatpush1.msra.mxu1 %v694_v14 }
 0x225   :  { %771 = vmatprep.subr.mxu1 %v693_v51 }
 0x226   :  { %772 = vmatpush1.msra.mxu1 %v692_v15 }
 0x227   :  { %1375 = vmatmul.mubr.msk.f32.vlgmr.msra.gmra.mxu1 %vm728_vm3, %v700_v16 }
 0x228   :  { %811 = vmatprep.mubr.f32.mxu1 %v1486_v5 }
 0x22b   :  { %1376 = vmatmul.mubr.msk.f32.gmra.mxu1 %vm728_vm3, %v701_v17 }
 0x22c   :  { %817 = vmatprep.mubr.f32.mxu1 %v1486_v5 }
 0x22f   :  { %1377 = vmatmul.mubr.msk.f32.gmra.mxu1 %vm728_vm3, %v702_v52 }
 0x230   :  { %823 = vmatprep.mubr.f32.mxu1 %v1486_v5 }
 0x233   :  { %1378 = vmatmul.mubr.msk.f32.gmra.mxu1 %vm728_vm3, %v703_v0 }
 0x234   :  { %912 = vmatprep.mubr.f32.mxu1 %v1486_v5 }
 0x2e7   :  { %v807_v53 = vpop.f32.mrf.mxu1 }
 0x2e8   :  { %v808_v9 = vadd.f32 %v807_v53, %v1880_v22 }
 0x2e9   :  { %v809_v54 = vpop.f32.mrf.mxu1 }
 0x2ea   :  { %v810_v7 = vadd.f32 %v809_v54, %v1880_v22 }
 0x2eb   :  { %v813_v55 = vpop.f32.mrf.mxu1 }
 0x2ec   :  { %v814_v5 = vadd.f32 %v813_v55, %v1878_v21 }
 0x2ed   :  { %v815_v56 = vpop.f32.mrf.mxu1 }
 0x2ee   :  { %v816_v3 = vadd.f32 %v815_v56, %v1878_v21  ;;  %v832_v12 = vmax.f32 %v814_v5, 0.0  ;;  %v838_v21 = vld [vmem:[%s2104_s11] sm:$0xf] }
 0x2ef   :  { %v819_v57 = vpop.f32.mrf.mxu1 }
 0x2f0   :  { %v820_v1 = vadd.f32 %v819_v57, %v1876_v20  ;;  %v833_v11 = vmax.f32 %v816_v3, 0.0 }
 0x2f1   :  { %v821_v58 = vpop.f32.mrf.mxu1 }
 0x2f2   :  { %v822_v62 = vadd.f32 %v821_v58, %v1876_v20  ;;  %v834_v10 = vmax.f32 %v820_v1, 0.0  ;;  %v830_v20 = vmax.f32 %v808_v9, 0.0 }
 0x2f3   :  { %v825_v59 = vpop.f32.mrf.mxu1 }
 0x2f4   :  { %v826_v60 = vadd.f32 %v825_v59, %v1874_v18  ;;  %v835_v8 = vmax.f32 %v822_v62, 0.0 }
 0x2f5   :  { %v827_v61 = vpop.f32.mrf.mxu1 }
 0x2f6   :  { %v828_v63 = vadd.f32 %v827_v61, %v1874_v18  ;;  %v836_v6 = vmax.f32 %v826_v60, 0.0  ;;  %v831_v18 = vmax.f32 %v810_v7, 0.0 }
 0x2f8   :  { %v837_v4 = vmax.f32 %v828_v63, 0.0 }
 0x2fa   :  { %872 = vmatprep.subr.mxu1 %v837_v4 }
 0x2fb   :  { %873 = vmatpush1.msra.mxu1 %v836_v6 }
 0x2fc   :  { %874 = vmatprep.subr.mxu1 %v835_v8 }
 0x2fd   :  { %875 = vmatpush1.msra.mxu1 %v834_v10 }
 0x2fe   :  { %876 = vmatprep.subr.mxu1 %v833_v11 }
 0x2ff   :  { %877 = vmatpush1.msra.mxu1 %v832_v12 }
 0x300   :  { %878 = vmatprep.subr.mxu1 %v831_v18 }
 0x301   :  { %879 = vmatpush1.msra.mxu1 %v830_v20 }
 0x302   :  { %1379 = vmatmul.mubr.msk.f32.vlgmr.msra.gmra.mxu1 %vm728_vm3, %v838_v21 }
 0x3c2   :  { %v914_v13 = vpop.f32.mrf.mxu1 }
 0x3c3   :  { %v915_v24 = vadd.f32 %v914_v13, %v2022_v2 }
 0x3c4   :  { %v916_v22 = vpop.f32.mrf.mxu1 }
 0x3c5   :  { %v917_v23 = vadd.f32 %v916_v22, %v2022_v2 }
 0x3c7   :  { %1210 = vmatprep.mubr.f32.mxu0 %v917_v23 }
 0x3c8   :  { %1211 = vmatmul.mubr.f32.vlgmr.msra.gmra.mxu0 %v915_v24 }
 0x488   :  { %v1477_v25 = vpop.f32.mrf.mxu0 }
 0x48a   :  { %v1478_v27 = vpop.f32.mrf.mxu0 }
 0x48b   :  { %v1479_v28 = vadd.f32 %v1478_v27, %v1477_v25 }
 0x48d   :  { %v1216_v29 = vadd.f32 %v1479_v28, %v1145_v26 }
 0x48f   :  { %1217 = vst [vmem:[#allocation2] sm:$0xf] %v1216_v29 }
 0x496   :  { %v1221_v31 = vld [vmem:[#allocation2] sm:$0xf] }
 0x497   :  { %v1229_v32 = vmul.f32 %v1444_v30, %v1221_v31 }
 0x499   :  { %1230 = vst [vmem:[%s2106_s14] sm:$0xf] %v1229_v32 }

</bundles_post_ra>
